<compile_context>
chip_gen: v6e
topology: v6e:2x2x1
jax: 0.10.0
libtpu: 0.0.40
codegen_flags: <defaults>
</compile_context>

<pallas_src>
import numpy as np
import jax
import jax.numpy as jnp
from jax.experimental import pallas as pl
from jax.experimental.pallas import tpu as pltpu

NUM_LAYERS = 3
BN_EPS = 1e-5

TM = 128            # nodes per packed tile (lane-dense for the A @ H matmul)
G_PER_TILE = 8      # graph slots per tile (sublane multiple)
IN_PAD = 128        # padded input-feature lanes   (== H_PAD so weights stack)
H_PAD = 128         # padded hidden lanes
OUT_PAD = 128       # padded output lanes (lane-dense store, sliced in wrapper)
AGG_DTYPE = jnp.bfloat16   # adjacency / aggregation operand dtype (f32 accumulate)

W1_IDX = 1 + NUM_LAYERS    # index of MLP Linear-1 in the weight stack
W2_IDX = 2 + NUM_LAYERS    # index of MLP Linear-2 in the weight stack


# ----------------------------------------------------------------------------- kernel
def molecular_gnn_kernel(x_ref, a_ref, pool_ref, w_ref, bias_ref, out_ref):
    x = x_ref[0]            # (TM, IN_PAD)        f32
    a = a_ref[0]            # (TM, TM)            bf16 block-diagonal adjacency tile
    pool = pool_ref[0]      # (G_PER_TILE, TM)    f32 mean-pool weights
    bias = bias_ref[...]    # (8, H_PAD)          packed bias/shift bank (f32)

    # embedding: Linear(in -> hidden)
    h = jnp.dot(x, w_ref[0], preferred_element_type=jnp.float32) + bias[0:1, :]

    # GNN blocks: GCNConv -> BatchNorm1d(eval, folded) -> ReLU -> Dropout(identity)
    # h stays resident in VMEM/vregs for the whole chain (static unroll, 3 layers).
    for l in range(NUM_LAYERS):
        hw = jnp.dot(h, w_ref[1 + l], preferred_element_type=jnp.float32)
        agg = jnp.dot(a, hw.astype(a.dtype), preferred_element_type=jnp.float32)
        h = jnp.maximum(agg + bias[1 + l:2 + l, :], 0.0)
    # TODO(synk): training-mode dropout (RNG masks) not implemented; eval-mode identity.

    # global mean pool (per graph slot packed into this tile)
    g = jnp.dot(pool, h, preferred_element_type=jnp.float32)        # (G_PER_TILE, H_PAD)

    # MLP head: Linear -> BN(eval, folded) -> ReLU -> Dropout(identity) -> Linear
    z = jnp.maximum(jnp.dot(g, w_ref[W1_IDX], preferred_element_type=jnp.float32)
                    + bias[W1_IDX:W1_IDX + 1, :], 0.0)
    out_ref[0] = (jnp.dot(z, w_ref[W2_IDX], preferred_element_type=jnp.float32)
                  + bias[W2_IDX:W2_IDX + 1, :])


# ------------------------------------------------------------------- host-side packing
def pack_graphs(x, edge_index, batch, num_graphs):
    """Pack molecules into fixed-size node tiles; build block-diagonal GCN adjacency
    blocks (D^-1/2 (A+I) D^-1/2, unit edge weights) and per-tile mean-pool matrices."""
    x_np = np.asarray(x, dtype=np.float32)
    ei = np.asarray(edge_index)
    b = np.asarray(batch)
    n_nodes, in_ch = x_np.shape
    assert in_ch <= IN_PAD

    graph_nodes = [np.nonzero(b == g)[0] for g in range(num_graphs)]

    # greedy sequential packing: fill a tile until node or graph-slot budget is hit
    tiles, cur, cur_n = [], [], 0
    for g in range(num_graphs):
        ng = len(graph_nodes[g])
        if ng > TM:
            raise ValueError(f"graph {g} has {ng} nodes > tile size {TM}")
        if cur and (cur_n + ng > TM or len(cur) >= G_PER_TILE):
            tiles.append(cur)
            cur, cur_n = [], 0
        cur.append(g)
        cur_n += ng
    if cur:
        tiles.append(cur)
    num_tiles = len(tiles)

    x_tiles = np.zeros((num_tiles, TM, IN_PAD), np.float32)
    a_blocks = np.zeros((num_tiles, TM, TM), np.float32)
    pool_blocks = np.zeros((num_tiles, G_PER_TILE, TM), np.float32)
    graph_row = np.zeros((num_graphs,), np.int32)
    node_tile = np.full((n_nodes,), -1, np.int64)
    node_local = np.full((n_nodes,), -1, np.int64)

    for t, gs in enumerate(tiles):
        off = 0
        for slot, g in enumerate(gs):
            nodes = graph_nodes[g]
            ng = len(nodes)
            node_tile[nodes] = t
            node_local[nodes] = off + np.arange(ng)
            x_tiles[t, off:off + ng, :in_ch] = x_np[nodes]
            pool_blocks[t, slot, off:off + ng] = 1.0 / ng
            graph_row[g] = t * G_PER_TILE + slot
            off += ng

    # adjacency: unit-weight edges (message src -> dst), self loops, symmetric norm
    src, dst = ei[0], ei[1]
    t_e = node_tile[src]
    if np.any(t_e != node_tile[dst]):
        raise ValueError("edge crosses graphs (inconsistent batch vector)")
    np.add.at(a_blocks, (t_e, node_local[dst], node_local[src]), 1.0)
    for t, gs in enumerate(tiles):
        n_t = int(sum(len(graph_nodes[g]) for g in gs))
        idx = np.arange(n_t)
        a_blocks[t, idx, idx] += 1.0                       # self loops (real nodes only)
        deg = a_blocks[t, :n_t, :n_t].sum(axis=1)
        dis = np.where(deg > 0, 1.0 / np.sqrt(deg), 0.0)
        a_blocks[t, :n_t, :n_t] = dis[:, None] * a_blocks[t, :n_t, :n_t] * dis[None, :]

    return (jnp.asarray(x_tiles),
            jnp.asarray(a_blocks, dtype=AGG_DTYPE),
            jnp.asarray(pool_blocks),
            jnp.asarray(graph_row),
            num_tiles)


# ------------------------------------------------------------------------- entry point
def molecular_gnn_forward(x, edge_index, batch, kparams, num_graphs):
    x_tiles, a_blocks, pool_blocks, graph_row, num_tiles = pack_graphs(
        x, edge_index, batch, num_graphs)

    out_padded = pl.pallas_call(
        molecular_gnn_kernel,
        out_shape=jax.ShapeDtypeStruct((num_tiles, G_PER_TILE, OUT_PAD), jnp.float32),
        grid=(num_tiles,),
        in_specs=[
            pl.BlockSpec((1, TM, IN_PAD), lambda i: (i, 0, 0)),            # x tiles
            pl.BlockSpec((1, TM, TM), lambda i: (i, 0, 0)),                # A_hat blocks
            pl.BlockSpec((1, G_PER_TILE, TM), lambda i: (i, 0, 0)),        # pool blocks
            pl.BlockSpec((NUM_LAYERS + 3, H_PAD, H_PAD), lambda i: (0, 0, 0)),  # weights
            pl.BlockSpec((8, H_PAD), lambda i: (0, 0)),                    # bias bank
        ],
        out_specs=pl.BlockSpec((1, G_PER_TILE, OUT_PAD), lambda i: (i, 0, 0)),
        compiler_params=pltpu.CompilerParams(
            dimension_semantics=("parallel",),       # tiles are independent (2 TCs on v7x)
            vmem_limit_bytes=32 * 1024 * 1024,
        ),
    )(x_tiles, a_blocks, pool_blocks, kparams["w_stack"], kparams["bias_bank"])

    out_flat = out_padded.reshape(num_tiles * G_PER_TILE, OUT_PAD)
    # gather real graphs (original order) and the real output lanes
    return out_flat[graph_row, :kparams["out_channels"]]


# -------------------------------------------------------------- parameters & BN folding
def fold_bn(gamma, beta, running_mean, running_var, eps=BN_EPS):
    scale = gamma / jnp.sqrt(running_var + eps)
    shift = beta - running_mean * scale
    return scale, shift


def _pad2(w, rows, cols):
    out = jnp.zeros((rows, cols), jnp.float32)
    return out.at[:w.shape[0], :w.shape[1]].set(w)


def _pad1(v, cols):
    out = jnp.zeros((cols,), jnp.float32)
    return out.at[:v.shape[0]].set(v)


def prepare_kernel_params(raw, out_channels):
    """Fold eval-mode BN into weights/shifts, zero-pad to 128 lanes, pack operands."""
    ws, biases = [], []
    ws.append(_pad2(raw["w_emb"], H_PAD, H_PAD))                 # IN_PAD == H_PAD
    biases.append(_pad1(raw["b_emb"], H_PAD))
    for l in range(NUM_LAYERS):
        scale, shift = fold_bn(raw["bn_gamma"][l], raw["bn_beta"][l],
                               raw["bn_mean"][l], raw["bn_var"][l])
        ws.append(_pad2(raw["wc"][l] * scale[None, :], H_PAD, H_PAD))
        biases.append(_pad1(raw["bc"][l] * scale + shift, H_PAD))
    scale1, shift1 = fold_bn(raw["bn1_gamma"], raw["bn1_beta"],
                             raw["bn1_mean"], raw["bn1_var"])
    ws.append(_pad2(raw["w1"] * scale1[None, :], H_PAD, H_PAD))
    biases.append(_pad1(raw["b1"] * scale1 + shift1, H_PAD))
    ws.append(_pad2(raw["w2"], H_PAD, OUT_PAD))
    biases.append(_pad1(raw["b2"], H_PAD))
    while len(biases) < 8:                                        # pad bank to 8 sublanes
        biases.append(jnp.zeros((H_PAD,), jnp.float32))
    return dict(w_stack=jnp.stack(ws),            # (NUM_LAYERS+3, 128, 128) f32
                bias_bank=jnp.stack(biases),      # (8, 128) f32
                out_channels=out_channels)


def make_raw_params(key, in_channels, hidden, out_channels):
    ks = jax.random.split(key, 18)

    def rnd(k, shape, scale=0.1):
        return (scale * jax.random.normal(k, shape)).astype(jnp.float32)

    return dict(
        w_emb=rnd(ks[0], (in_channels, hidden)),
        b_emb=rnd(ks[1], (hidden,)),
        wc=rnd(ks[2], (NUM_LAYERS, hidden, hidden)),
        bc=rnd(ks[3], (NUM_LAYERS, hidden)),
        bn_gamma=1.0 + rnd(ks[4], (NUM_LAYERS, hidden)),
        bn_beta=rnd(ks[5], (NUM_LAYERS, hidden)),
        bn_mean=rnd(ks[6], (NUM_LAYERS, hidden), 0.05),
        bn_var=0.5 + jax.random.uniform(ks[7], (NUM_LAYERS, hidden), jnp.float32),
        w1=rnd(ks[8], (hidden, hidden)),
        b1=rnd(ks[9], (hidden,)),
        bn1_gamma=1.0 + rnd(ks[10], (hidden,)),
        bn1_beta=rnd(ks[11], (hidden,)),
        bn1_mean=rnd(ks[12], (hidden,), 0.05),
        bn1_var=0.5 + jax.random.uniform(ks[13], (hidden,), jnp.float32),
        w2=rnd(ks[14], (hidden, out_channels)),
        b2=rnd(ks[15], (out_channels,)),
    )


# ---------------------------------------------------------------------------- references
def build_gcn_adjacency(edge_index, num_nodes):
    src, dst = edge_index[0], edge_index[1]
    a = jnp.zeros((num_nodes, num_nodes), jnp.float32)
    a = a.at[dst, src].add(1.0)
    a = a + jnp.eye(num_nodes, dtype=jnp.float32)
    deg = a.sum(axis=1)
    dis = jnp.where(deg > 0, 1.0 / jnp.sqrt(deg), 0.0)
    return dis[:, None] * a * dis[None, :]


def build_mean_pool_matrix(batch, num_graphs, num_nodes):
    onehot = (batch[None, :] == jnp.arange(num_graphs)[:, None]).astype(jnp.float32)
    counts = jnp.maximum(onehot.sum(axis=1, keepdims=True), 1.0)
    return onehot / counts


def reference_module(x, edge_index, batch, raw, num_graphs):
    """Pure-f32 JAX reference with the PyTorch module's eval-mode math (no folding)."""
    a_hat = build_gcn_adjacency(edge_index, x.shape[0])
    pool = build_mean_pool_matrix(batch, num_graphs, x.shape[0])
    h = x @ raw["w_emb"] + raw["b_emb"][None, :]
    for l in range(NUM_LAYERS):
        y = a_hat @ (h @ raw["wc"][l]) + raw["bc"][l][None, :]
        y = ((y - raw["bn_mean"][l]) / jnp.sqrt(raw["bn_var"][l] + BN_EPS)
             * raw["bn_gamma"][l] + raw["bn_beta"][l])
        h = jnp.maximum(y, 0.0)
    g = pool @ h
    z = g @ raw["w1"] + raw["b1"][None, :]
    z = ((z - raw["bn1_mean"]) / jnp.sqrt(raw["bn1_var"] + BN_EPS)
         * raw["bn1_gamma"] + raw["bn1_beta"])
    z = jnp.maximum(z, 0.0)
    return z @ raw["w2"] + raw["b2"][None, :]


def reference_kernel_math(x, edge_index, batch, kparams, num_graphs):
    """Pure-JAX mirror of the kernel math (folded BN + bf16 aggregation operands)."""
    a_hat = build_gcn_adjacency(edge_index, x.shape[0]).astype(AGG_DTYPE)
    pool = build_mean_pool_matrix(batch, num_graphs, x.shape[0])
    w, b = kparams["w_stack"], kparams["bias_bank"]
    in_ch = x.shape[1]
    h = x @ w[0, :in_ch, :] + b[0][None, :]
    for l in range(NUM_LAYERS):
        hw = h @ w[1 + l]
        h = jnp.maximum(jnp.dot(a_hat, hw.astype(AGG_DTYPE),
                                preferred_element_type=jnp.float32)
                        + b[1 + l][None, :], 0.0)
    g = pool @ h
    z = jnp.maximum(g @ w[W1_IDX] + b[W1_IDX][None, :], 0.0)
    out = z @ w[W2_IDX] + b[W2_IDX][None, :]
    return out[:, :kparams["out_channels"]]


# --------------------------------------------------------------------------------- main
if __name__ == "__main__":
    key = jax.random.PRNGKey(0)
    k_x, k_p = jax.random.split(key)

    in_channels, hidden, out_channels = 8, 32, 1

    # 20 small "molecules": ring graphs of 6..14 nodes, packed into 3 node tiles.
    ring_sizes = [6 + (i * 5) % 9 for i in range(20)]
    num_graphs = len(ring_sizes)
    edges, batch_list, offset = [], [], 0
    for g, n in enumerate(ring_sizes):
        for i in range(n):
            a, b = offset + i, offset + (i + 1) % n
            edges.append((a, b))
            edges.append((b, a))
        batch_list.extend([g] * n)
        offset += n
    num_nodes = offset
    edge_index = jnp.array(edges, dtype=jnp.int32).T          # [2, num_edges]
    batch = jnp.array(batch_list, dtype=jnp.int32)            # [num_nodes]
    x = jax.random.normal(k_x, (num_nodes, in_channels), jnp.float32)

    raw = make_raw_params(k_p, in_channels, hidden, out_channels)
    kparams = prepare_kernel_params(raw, out_channels)

    out = molecular_gnn_forward(x, edge_index, batch, kparams, num_graphs)
    out = jax.block_until_ready(out)
    assert out.shape == (num_graphs, out_channels)

    # (1) tight check against a pure-JAX mirror of the kernel math (folding/packing/bf16)
    ref_k = reference_kernel_math(x, edge_index, batch, kparams, num_graphs)
    assert jnp.allclose(out, ref_k, atol=2e-3, rtol=2e-3), \
        float(jnp.max(jnp.abs(out - ref_k)))

    # (2) looser check against the faithful f32 module math (bf16 aggregation tolerance)
    ref_m = reference_module(x, edge_index, batch, raw, num_graphs)
    assert jnp.allclose(out, ref_m, atol=3e-2, rtol=3e-2), \
        float(jnp.max(jnp.abs(out - ref_m)))

    print("KERNEL_OK")
</pallas_src>

<mosaic_0001>
module attributes {stable_mosaic.version = 11 : i64} {
  func.func @molecular_gnn_kernel(%arg0: i32, %arg1: memref<1x128x128xf32, #tpu.memory_space<vmem>>, %arg2: memref<1x128x128xbf16, #tpu.memory_space<vmem>>, %arg3: memref<1x8x128xf32, #tpu.memory_space<vmem>>, %arg4: memref<6x128x128xf32, #tpu.memory_space<vmem>>, %arg5: memref<8x128xf32, #tpu.memory_space<vmem>>, %arg6: memref<1x8x128xf32, #tpu.memory_space<vmem>>) attributes {dimension_semantics = [#tpu.dimension_semantics<parallel>], iteration_bounds = array<i64: 3>, scalar_prefetch = 0 : i64, scratch_operands = 0 : i64, tpu.core_type = #tpu.core_type<tc>, window_params = [{transform_indices = @transform_0, window_bounds = array<i64: 1, 128, 128>}, {transform_indices = @transform_1, window_bounds = array<i64: 1, 128, 128>}, {transform_indices = @transform_2, window_bounds = array<i64: 1, 8, 128>}, {pipeline_mode = #tpu.pipeline_mode<synchronous>, transform_indices = @transform_3, window_bounds = array<i64: 6, 128, 128>}, {pipeline_mode = #tpu.pipeline_mode<synchronous>, transform_indices = @transform_4, window_bounds = array<i64: 8, 128>}, {transform_indices = @transform_5, window_bounds = array<i64: 1, 8, 128>}]} {
    %c0 = arith.constant 0 : index
    %c0_0 = arith.constant 0 : index
    %c0_1 = arith.constant 0 : index
    %0 = vector.load %arg1[%c0, %c0_0, %c0_1] : memref<1x128x128xf32, #tpu.memory_space<vmem>>, vector<1x128x128xf32>
    %1 = vector.shape_cast %0 : vector<1x128x128xf32> to vector<128x128xf32>
    %c0_2 = arith.constant 0 : index
    %c0_3 = arith.constant 0 : index
    %c0_4 = arith.constant 0 : index
    %2 = vector.load %arg2[%c0_2, %c0_3, %c0_4] : memref<1x128x128xbf16, #tpu.memory_space<vmem>>, vector<1x128x128xbf16>
    %3 = vector.shape_cast %2 : vector<1x128x128xbf16> to vector<128x128xbf16>
    %c0_5 = arith.constant 0 : index
    %c0_6 = arith.constant 0 : index
    %c0_7 = arith.constant 0 : index
    %4 = vector.load %arg3[%c0_5, %c0_6, %c0_7] : memref<1x8x128xf32, #tpu.memory_space<vmem>>, vector<1x8x128xf32>
    %5 = vector.shape_cast %4 : vector<1x8x128xf32> to vector<8x128xf32>
    %c0_8 = arith.constant 0 : index
    %c0_9 = arith.constant 0 : index
    %6 = vector.load %arg5[%c0_8, %c0_9] : memref<8x128xf32, #tpu.memory_space<vmem>>, vector<8x128xf32>
    %c0_10 = arith.constant 0 : index
    %c0_11 = arith.constant 0 : index
    %c0_12 = arith.constant 0 : index
    %7 = vector.load %arg4[%c0_10, %c0_11, %c0_12] : memref<6x128x128xf32, #tpu.memory_space<vmem>>, vector<1x128x128xf32>
    %8 = vector.shape_cast %7 : vector<1x128x128xf32> to vector<128x128xf32>
    %cst = arith.constant dense<0.000000e+00> : vector<128x128xf32>
    %9 = tpu.matmul %1, %8, %cst {dimension_numbers = #tpu.dot_dimension_numbers<[1], [0], [0], [1], [0, 0, 1, 1], [], []>} : vector<128x128xf32>, vector<128x128xf32>, vector<128x128xf32> -> vector<128x128xf32>
    %10 = vector.extract_strided_slice %6 {offsets = [0, 0], sizes = [1, 128], strides = [1, 1]} : vector<8x128xf32> to vector<1x128xf32>
    %11 = vector.broadcast %10 : vector<1x128xf32> to vector<128x128xf32>
    %12 = arith.addf %9, %11 : vector<128x128xf32>
    %c1 = arith.constant 1 : index
    %c0_13 = arith.constant 0 : index
    %c0_14 = arith.constant 0 : index
    %13 = vector.load %arg4[%c1, %c0_13, %c0_14] : memref<6x128x128xf32, #tpu.memory_space<vmem>>, vector<1x128x128xf32>
    %14 = vector.shape_cast %13 : vector<1x128x128xf32> to vector<128x128xf32>
    %cst_15 = arith.constant dense<0.000000e+00> : vector<128x128xf32>
    %15 = tpu.matmul %12, %14, %cst_15 {dimension_numbers = #tpu.dot_dimension_numbers<[1], [0], [0], [1], [0, 0, 1, 1], [], []>} : vector<128x128xf32>, vector<128x128xf32>, vector<128x128xf32> -> vector<128x128xf32>
    %16 = arith.truncf %15 : vector<128x128xf32> to vector<128x128xbf16>
    %cst_16 = arith.constant dense<0.000000e+00> : vector<128x128xf32>
    %17 = tpu.matmul %3, %16, %cst_16 {dimension_numbers = #tpu.dot_dimension_numbers<[1], [0], [0], [1], [0, 0, 1, 1], [], []>} : vector<128x128xbf16>, vector<128x128xbf16>, vector<128x128xf32> -> vector<128x128xf32>
    %18 = vector.extract_strided_slice %6 {offsets = [1, 0], sizes = [1, 128], strides = [1, 1]} : vector<8x128xf32> to vector<1x128xf32>
    %19 = vector.broadcast %18 : vector<1x128xf32> to vector<128x128xf32>
    %20 = arith.addf %17, %19 : vector<128x128xf32>
    %cst_17 = arith.constant 0.000000e+00 : f32
    %21 = vector.broadcast %cst_17 : f32 to vector<128x128xf32>
    %22 = arith.maximumf %20, %21 : vector<128x128xf32>
    %c2 = arith.constant 2 : index
    %c0_18 = arith.constant 0 : index
    %c0_19 = arith.constant 0 : index
    %23 = vector.load %arg4[%c2, %c0_18, %c0_19] : memref<6x128x128xf32, #tpu.memory_space<vmem>>, vector<1x128x128xf32>
    %24 = vector.shape_cast %23 : vector<1x128x128xf32> to vector<128x128xf32>
    %cst_20 = arith.constant dense<0.000000e+00> : vector<128x128xf32>
    %25 = tpu.matmul %22, %24, %cst_20 {dimension_numbers = #tpu.dot_dimension_numbers<[1], [0], [0], [1], [0, 0, 1, 1], [], []>} : vector<128x128xf32>, vector<128x128xf32>, vector<128x128xf32> -> vector<128x128xf32>
    %26 = arith.truncf %25 : vector<128x128xf32> to vector<128x128xbf16>
    %cst_21 = arith.constant dense<0.000000e+00> : vector<128x128xf32>
    %27 = tpu.matmul %3, %26, %cst_21 {dimension_numbers = #tpu.dot_dimension_numbers<[1], [0], [0], [1], [0, 0, 1, 1], [], []>} : vector<128x128xbf16>, vector<128x128xbf16>, vector<128x128xf32> -> vector<128x128xf32>
    %28 = vector.extract_strided_slice %6 {offsets = [2, 0], sizes = [1, 128], strides = [1, 1]} : vector<8x128xf32> to vector<1x128xf32>
    %29 = vector.broadcast %28 : vector<1x128xf32> to vector<128x128xf32>
    %30 = arith.addf %27, %29 : vector<128x128xf32>
    %cst_22 = arith.constant 0.000000e+00 : f32
    %31 = vector.broadcast %cst_22 : f32 to vector<128x128xf32>
    %32 = arith.maximumf %30, %31 : vector<128x128xf32>
    %c3 = arith.constant 3 : index
    %c0_23 = arith.constant 0 : index
    %c0_24 = arith.constant 0 : index
    %33 = vector.load %arg4[%c3, %c0_23, %c0_24] : memref<6x128x128xf32, #tpu.memory_space<vmem>>, vector<1x128x128xf32>
    %34 = vector.shape_cast %33 : vector<1x128x128xf32> to vector<128x128xf32>
    %cst_25 = arith.constant dense<0.000000e+00> : vector<128x128xf32>
    %35 = tpu.matmul %32, %34, %cst_25 {dimension_numbers = #tpu.dot_dimension_numbers<[1], [0], [0], [1], [0, 0, 1, 1], [], []>} : vector<128x128xf32>, vector<128x128xf32>, vector<128x128xf32> -> vector<128x128xf32>
    %36 = arith.truncf %35 : vector<128x128xf32> to vector<128x128xbf16>
    %cst_26 = arith.constant dense<0.000000e+00> : vector<128x128xf32>
    %37 = tpu.matmul %3, %36, %cst_26 {dimension_numbers = #tpu.dot_dimension_numbers<[1], [0], [0], [1], [0, 0, 1, 1], [], []>} : vector<128x128xbf16>, vector<128x128xbf16>, vector<128x128xf32> -> vector<128x128xf32>
    %38 = vector.extract_strided_slice %6 {offsets = [3, 0], sizes = [1, 128], strides = [1, 1]} : vector<8x128xf32> to vector<1x128xf32>
    %39 = vector.broadcast %38 : vector<1x128xf32> to vector<128x128xf32>
    %40 = arith.addf %37, %39 : vector<128x128xf32>
    %cst_27 = arith.constant 0.000000e+00 : f32
    %41 = vector.broadcast %cst_27 : f32 to vector<128x128xf32>
    %42 = arith.maximumf %40, %41 : vector<128x128xf32>
    %cst_28 = arith.constant dense<0.000000e+00> : vector<8x128xf32>
    %43 = tpu.matmul %5, %42, %cst_28 {dimension_numbers = #tpu.dot_dimension_numbers<[1], [0], [0], [1], [0, 0, 1, 1], [], []>} : vector<8x128xf32>, vector<128x128xf32>, vector<8x128xf32> -> vector<8x128xf32>
    %c4 = arith.constant 4 : index
    %c0_29 = arith.constant 0 : index
    %c0_30 = arith.constant 0 : index
    %44 = vector.load %arg4[%c4, %c0_29, %c0_30] : memref<6x128x128xf32, #tpu.memory_space<vmem>>, vector<1x128x128xf32>
    %45 = vector.shape_cast %44 : vector<1x128x128xf32> to vector<128x128xf32>
    %cst_31 = arith.constant dense<0.000000e+00> : vector<8x128xf32>
    %46 = tpu.matmul %43, %45, %cst_31 {dimension_numbers = #tpu.dot_dimension_numbers<[1], [0], [0], [1], [0, 0, 1, 1], [], []>} : vector<8x128xf32>, vector<128x128xf32>, vector<8x128xf32> -> vector<8x128xf32>
    %47 = vector.extract_strided_slice %6 {offsets = [4, 0], sizes = [1, 128], strides = [1, 1]} : vector<8x128xf32> to vector<1x128xf32>
    %48 = vector.broadcast %47 : vector<1x128xf32> to vector<8x128xf32>
    %49 = arith.addf %46, %48 : vector<8x128xf32>
    %cst_32 = arith.constant 0.000000e+00 : f32
    %50 = vector.broadcast %cst_32 : f32 to vector<8x128xf32>
    %51 = arith.maximumf %49, %50 : vector<8x128xf32>
    %c5 = arith.constant 5 : index
    %c0_33 = arith.constant 0 : index
    %c0_34 = arith.constant 0 : index
    %52 = vector.load %arg4[%c5, %c0_33, %c0_34] : memref<6x128x128xf32, #tpu.memory_space<vmem>>, vector<1x128x128xf32>
    %53 = vector.shape_cast %52 : vector<1x128x128xf32> to vector<128x128xf32>
    %cst_35 = arith.constant dense<0.000000e+00> : vector<8x128xf32>
    %54 = tpu.matmul %51, %53, %cst_35 {dimension_numbers = #tpu.dot_dimension_numbers<[1], [0], [0], [1], [0, 0, 1, 1], [], []>} : vector<8x128xf32>, vector<128x128xf32>, vector<8x128xf32> -> vector<8x128xf32>
    %55 = vector.extract_strided_slice %6 {offsets = [5, 0], sizes = [1, 128], strides = [1, 1]} : vector<8x128xf32> to vector<1x128xf32>
    %56 = vector.broadcast %55 : vector<1x128xf32> to vector<8x128xf32>
    %57 = arith.addf %54, %56 : vector<8x128xf32>
    %c0_36 = arith.constant 0 : index
    %c0_37 = arith.constant 0 : index
    %c0_38 = arith.constant 0 : index
    %58 = vector.load %arg6[%c0_36, %c0_37, %c0_38] : memref<1x8x128xf32, #tpu.memory_space<vmem>>, vector<1x8x128xf32>
    %59 = vector.shape_cast %58 : vector<1x8x128xf32> to vector<8x128xf32>
    %60 = vector.shape_cast %57 : vector<8x128xf32> to vector<1x8x128xf32>
    tpu.vector_store %arg6[%c0_36, %c0_37, %c0_38], %60 {strides = array<i32>} : memref<1x8x128xf32, #tpu.memory_space<vmem>>, vector<1x8x128xf32>,
    return
  }
  func.func @transform_0(%arg0: i32) -> (i32, i32, i32) {
    %c0_i32 = arith.constant 0 : i32
    %c0_i32_0 = arith.constant 0 : i32
    %c0_i32_1 = arith.constant 0 : i32
    return %arg0, %c0_i32, %c0_i32_0 : i32, i32, i32
  }
  func.func @transform_1(%arg0: i32) -> (i32, i32, i32) {
    %c0_i32 = arith.constant 0 : i32
    %c0_i32_0 = arith.constant 0 : i32
    %c0_i32_1 = arith.constant 0 : i32
    return %arg0, %c0_i32, %c0_i32_0 : i32, i32, i32
  }
  func.func @transform_2(%arg0: i32) -> (i32, i32, i32) {
    %c0_i32 = arith.constant 0 : i32
    %c0_i32_0 = arith.constant 0 : i32
    %c0_i32_1 = arith.constant 0 : i32
    return %arg0, %c0_i32, %c0_i32_0 : i32, i32, i32
  }
  func.func @transform_3(%arg0: i32) -> (i32, i32, i32) {
    %c0_i32 = arith.constant 0 : i32
    %c0_i32_0 = arith.constant 0 : i32
    %c0_i32_1 = arith.constant 0 : i32
    %c0_i32_2 = arith.constant 0 : i32
    return %c0_i32, %c0_i32_0, %c0_i32_1 : i32, i32, i32
  }
  func.func @transform_4(%arg0: i32) -> (i32, i32) {
    %c0_i32 = arith.constant 0 : i32
    %c0_i32_0 = arith.constant 0 : i32
    %c0_i32_1 = arith.constant 0 : i32
    return %c0_i32, %c0_i32_0 : i32, i32
  }
  func.func @transform_5(%arg0: i32) -> (i32, i32, i32) {
    %c0_i32 = arith.constant 0 : i32
    %c0_i32_0 = arith.constant 0 : i32
    %c0_i32_1 = arith.constant 0 : i32
    return %arg0, %c0_i32, %c0_i32_0 : i32, i32, i32
  }
}

</mosaic_0001>

<bundles_post_ra>
// kernel: tpu_custom_call.1
= control target key start
LH: loop header
LB: loop body
LE: loop exit
PB: predicated region body
PF: predicated region fallthrough
CT: control target
= control target key end

     0   :  { %s3291_s0 = inlined_call_operand.hbm [shape: f32[3,128,128], index: 0, kind: input, shape index: {}]   ;;  %s3292_s1 = inlined_call_operand.hbm [shape: bf16[3,128,128], index: 1, kind: input, shape index: {}]   ;;  %s3293_s2 = inlined_call_operand.hbm [shape: f32[3,8,128], index: 2, kind: input, shape index: {}]   ;;  %s3294_s3 = inlined_call_operand.hbm [shape: f32[6,128,128], index: 3, kind: input, shape index: {}]   ;;  %s3295_s4 = inlined_call_operand.hbm [shape: f32[8,128], index: 4, kind: input, shape index: {}]   ;;  %s3296_s5 = inlined_call_operand.hbm [shape: f32[3,8,128], index: 5, kind: output, shape index: {}]  }
   0x1   :  { %3309 = sst [smem:[#allocation19_spill]] %s3291_s0 }
   0x2   :  { %3310 = sst [smem:[#allocation20_spill]] %s3292_s1 }
   0x3   :  { %3311 = sst [smem:[#allocation21_spill]] %s3294_s3 }
   0x4   :  { %3312 = sst [smem:[#allocation22_spill]] %s3295_s4 }
   0x5   :  { %10 = vsyncpa [#allocation3], 0 }
   0x6   :  { %12 = vsyncpa [#allocation3 + $0x1], 0 }
   0x7   :  { %13 = vsyncpa [#allocation6], 0 }
   0x8   :  { %15 = vsyncpa [#allocation6 + $0x1], 0 }
   0x9   :  { %16 = vsyncpa [#allocation9], 0 }
   0xa   :  { %17 = vsyncpa [#allocation4], 0 }
   0xb   :  { %19 = vsyncpa [#allocation4 + $0x1], 0  ;;  %s2883_s18 = smov 0   ;;  %s2885_s19 = smov 0  }
   0xc   :  { %s2887_s20 = smov 0   ;;  %s2889_s21 = smov 0  }
   0xd LB: > { %3313 = sst [smem:[#allocation16_spill]] %s2835_s20  ;;  %s2904_s22 = sadd.s32 4294967295, %s2839_s21   ;;  %s2839_s21 = sphi %s2889_s21, %s3338_s21   ;;  %s2835_s20 = sphi %s2887_s20, %s3340_s20   ;;  %s2831_s19 = sphi %s2885_s19, %s3342_s19   ;;  %s2827_s18 = sphi %s2883_s18, %s3341_s18  }
   0xe   : > { %s1853_s23 = sadd.s32 4294967294, %s2839_s21   ;;  %s2908_s24 = sadd.s32 1, %s2839_s21  }
   0xf   : > { %3314 = sst [smem:[#allocation17_spill]] %s2908_s24  ;;  %s32_s25 = sadd.s32 1, %s2835_s20 }
  0x10   : > { %s29_s26 = ssub.s32 %s2839_s21, %s2908_s24  ;;  %p39_p0 = scmp.ne.s32.totalorder %s2835_s20, %s2831_s19 }
  0x11   : > { %p30_p1 = scmp.eq.s32.totalorder %s29_s26, 0  ;;  %p40_p2 = scmp.eq.s32.totalorder %s2839_s21, 0 }
  0x12   : > { %p45_p3 = scmp.ne.s32.totalorder %s2831_s19, %s2827_s18  ;;  %p3297_p4 = scmp.eq.s32.totalorder %s2904_s22, 0 }
  0x13   : > { %s2920_s27 = scalar_select %p30_p1, %s2835_s20, %s32_s25  }
  0x14   : > { %p2922_p5 = por %p40_p2, %p39_p0  ;;  %p2928_p6 = por %p3297_p4, %p45_p3 }
  0x15   : > { %3315 = sst [smem:[#allocation18_spill]] %s2920_s27  ;;  %p163_p7 = scmp.eq.s32.totalorder %s2904_s22, 2 }
  0x16   : > { %s3317_s29 = scalar_select %p2928_p6, 1, 0 }
  0x17   : > { %p169_p8 = scmp.eq.s32.totalorder %s1853_s23, 2  ;;  %p1854_p9 = scmp.ge.s32.totalorder %s2839_s21, 1 }
  0x18   : > { %p176_p10 = scmp.lt.s32.totalorder %s2839_s21, 4  ;;  %p2935_p11 = por %p163_p7, %p39_p0 }
  0x19   : > { %p2939_p12 = por %p169_p8, %p45_p3  ;;  %s2841_s8 = smov [#allocation8]  }
  0x1a   : > { %s3318_s30 = scalar_select %p2935_p11, 1, 0 }
  0x1b   : > { %s3319_s6 = scalar_select %p2939_p12, 1, 0 }
  0x1c   : > { %p2943_p13 = pnand %p1854_p9, %p176_p10  ;;  %s188_s9 = sshll.u32 %s2841_s8, 4  ;;  %s189_s9 = int_to_ptr.vmem [resolvable:$true] %s188_s9 }
  0x1d   : > { %p2578_p0 = scmp.lt.s32.totalorder %s2839_s21, 3  ;;  %s2957_s11 = sand.u32 1, %s2835_s20  }
  0x1e   : > { %s3320_s7 = scalar_select %p2943_p13, 1, 0 }
  0x1f   : > { %p2555_p1 = pneg %p2943_p13  ;;  %s234_s12 = sand.u32 1, %s2839_s21  }
  0x20   : > { %s2642_s13 = scalar_lea.vmem %s189_s9, 12288  ;;  %p2650_p10 = scmp.lt.s32.totalorder %s189_s9, %s189_s9 }
  0x21   : > { %p2951_p2 = pnand %p2555_p1, %p3297_p4  ;;  %p2643_p7 = scmp.ne.s32.totalorder %s189_s9, %s2642_s13 }
  0x22   : > { %p2651_p12 = scmp.lt.s32.totalorder %s2642_s13, %s2642_s13 }
  0x23   : > { %s3321_s10 = scalar_select %p2951_p2, 1, 0 }
  0x24   : > { %p3299_p3 = pneg %p2951_p2  ;;  %p2652_p1 = por %p2651_p12, %p2650_p10 }
  0x26   : > { %p2645_p8 = pnand %p2643_p7, %p3299_p3 }
  0x28   : > { %p2646_p9 = pneg %p2645_p8 }
  0x2a   : > { %p2653_p4 = pnand %p2652_p1, %p2646_p9 }
  0x2c   : > { %2656 = shalt.err (!%p2653_p4)
}
  0x2d   : > { %s3300_s14 = smov 128   ;;  %s3306_s15 = smov 8  }
  0x2e   : > { %s3322_s3 = sld [smem:[#allocation21_spill]]  ;;  %p2977_p12 = pnand %p2578_p0, %p2922_p5 }
  0x2f   : > { %s1861_s25 = sshll.u32 %s2957_s11, 6  ;;  %s1886_s26 = sshll.u32 %s2839_s21, 10 }
  0x30   : > { %s3324_s1 = sld [smem:[#allocation20_spill]]  ;;  %s238_s20 = scalar_lea.vmem [#allocation5], %s1861_s25 }
  0x31   : > { %s245_s16 = sshll.u32 %s238_s20, 4  ;;  %s2990_s28 = scalar_lea.sflag [#allocation6], %s234_s12  ;;  %s2988_s16 = int_to_ptr.vmem [resolvable:$true] %s245_s16 }
  0x32   : > { %p2996_p5 = pneg %p2977_p12 }
  0x34   : > { %2558 = dma.hbm_to_vmem [thread:$0]  (!%p2951_p2), %s3322_s3, 12288, %s189_s9, [#allocation9], %s3300_s14, %s3300_s14, %s3306_s15  }
  0x36   : > { %s2986_s27 = scalar_lea.hbm %s3324_s1, %s1886_s26  ;;  %s2662_s25 = scalar_lea.hbm %s3324_s1, 3072 }
  0x37   : > { %s2657_s9 = scalar_lea.hbm %s2986_s27, 1024  ;;  %p2663_p8 = scmp.lt.s32.totalorder %s2986_s27, %s3324_s1 }
  0x38   : > { %p2658_p4 = scmp.ne.s32.totalorder %s2986_s27, %s2657_s9  ;;  %p2664_p9 = scmp.lt.s32.totalorder %s2662_s25, %s2657_s9 }
  0x3a   : > { %p2660_p0 = pnand %p2996_p5, %p2658_p4  ;;  %p2665_p10 = por %p2664_p9, %p2663_p8 }
  0x3c   : > { %p2661_p7 = pneg %p2660_p0 }
  0x3e   : > { %p2666_p1 = pnand %p2665_p10, %p2661_p7 }
  0x40   : > { %2669 = shalt.err (!%p2666_p1)
}
  0x41   : > { %s2670_s12 = scalar_lea.vmem %s2988_s16, 1024  ;;  %s2844_s14 = smov [#allocation5]  }
  0x42   : > { %p2671_p3 = scmp.ne.s32.totalorder %s2988_s16, %s2670_s12  ;;  %s2675_s26 = sshll.u32 %s2844_s14, 4  ;;  %s2676_s26 = int_to_ptr.vmem [resolvable:$false] %s2675_s26 }
  0x43   : > { %s2677_s8 = scalar_lea.vmem %s2676_s26, 2048  ;;  %p2678_p11 = scmp.lt.s32.totalorder %s2988_s16, %s2676_s26 }
  0x44   : > { %p2673_p4 = pnand %p2671_p3, %p2996_p5  ;;  %p2679_p6 = scmp.lt.s32.totalorder %s2677_s8, %s2670_s12 }
  0x46   : > { %p2674_p0 = pneg %p2673_p4  ;;  %p2680_p13 = por %p2679_p6, %p2678_p11 }
  0x48   : > { %p2681_p2 = pnand %p2680_p13, %p2674_p0 }
  0x4a   : > { %2684 = shalt.err (!%p2681_p2)
}
  0x4b   : > { %s2845_s9 = smov 64   ;;  %s2846_s25 = smov 4  }
  0x4c   : > { %2568 = dma.hbm_to_vmem [thread:$0]  (!%p2977_p12), %s2986_s27, 1024, %s2988_s16, %s2990_s28, %s2845_s9, %s2845_s9, %s2846_s25  }
  0x4d   : > { %s2847_s20 = smov [#allocation10]   ;;  %s1858_s14 = sshll.u32 %s2957_s11, 7 }
  0x4e   : > { %s202_s13 = sshll.u32 %s2847_s20, 4  ;;  %p3326_p7 = scmp.ne.s32.totalorder %s3321_s10, 0  ;;  %s203_s13 = int_to_ptr.vmem [resolvable:$true] %s202_s13 }
  0x4f   : > { %s2696_s15 = scalar_lea.vmem %s203_s13, 128  ;;  %p2704_p2 = scmp.lt.s32.totalorder %s203_s13, %s203_s13 }
  0x50   : > { %p2697_p3 = scmp.ne.s32.totalorder %s203_s13, %s2696_s15  ;;  %p3327_p6 = pneg %p3326_p7 }
  0x51   : > { %p2705_p8 = scmp.lt.s32.totalorder %s2696_s15, %s2696_s15 }
  0x52   : > { %p2699_p11 = pnand %p2697_p3, %p3327_p6 }
  0x53   : > { %p2706_p9 = por %p2705_p8, %p2704_p2 }
  0x54   : > { %p2700_p13 = pneg %p2699_p11 }
  0x56   : > { %p2707_p10 = pnand %p2706_p9, %p2700_p13 }
  0x58   : > { %2710 = shalt.err (!%p2707_p10)
}
  0x59   : > { %s3328_s4 = sld [smem:[#allocation22_spill]]  ;;  %s1885_s27 = sshll.u32 %s2839_s21, 11 }
  0x5a   : > { %s3329_s0 = sld [smem:[#allocation19_spill]]  ;;  %s217_s15 = scalar_lea.vmem [#allocation2], %s1858_s14 }
  0x5b   : > { %s224_s25 = sshll.u32 %s217_s15, 4  ;;  %s1864_s10 = sshll.u32 %s2957_s11, 3  ;;  %s3034_s25 = int_to_ptr.vmem [resolvable:$true] %s224_s25 }
  0x5c   : > { %s214_s20 = scalar_lea.sflag [#allocation3], %s2957_s11 }
  0x5f   : > { %2561 = dma.hbm_to_vmem [thread:$0]  (!%p3326_p7), %s3328_s4, 128, %s203_s13, [#allocation9]  }
  0x60   : > { %s3032_s9 = scalar_lea.hbm %s3329_s0, %s1885_s27  ;;  %s2716_s16 = scalar_lea.hbm %s3329_s0, 6144 }
  0x61   : > { %s2711_s12 = scalar_lea.hbm %s3032_s9, 2048  ;;  %p2717_p3 = scmp.lt.s32.totalorder %s3032_s9, %s3329_s0 }
  0x62   : > { %p2712_p1 = scmp.ne.s32.totalorder %s3032_s9, %s2711_s12  ;;  %p2718_p7 = scmp.lt.s32.totalorder %s2716_s16, %s2711_s12 }
  0x64   : > { %p2714_p4 = pnand %p2712_p1, %p2996_p5  ;;  %p2719_p6 = por %p2718_p7, %p2717_p3 }
  0x66   : > { %p2715_p0 = pneg %p2714_p4 }
  0x68   : > { %p2720_p11 = pnand %p2719_p6, %p2715_p0 }
  0x6a   : > { %2723 = shalt.err (!%p2720_p11)
}
  0x6b   : > { %s2724_s14 = scalar_lea.vmem %s3034_s25, 2048  ;;  %s2848_s15 = smov [#allocation2]  }
  0x6c   : > { %p2725_p13 = scmp.ne.s32.totalorder %s3034_s25, %s2724_s14  ;;  %s2729_s13 = sshll.u32 %s2848_s15, 4  ;;  %s2730_s13 = int_to_ptr.vmem [resolvable:$false] %s2729_s13 }
  0x6d   : > { %s2731_s26 = scalar_lea.vmem %s2730_s13, 4096  ;;  %p2732_p9 = scmp.lt.s32.totalorder %s3034_s25, %s2730_s13 }
  0x6e   : > { %p2727_p2 = pnand %p2725_p13, %p2996_p5  ;;  %p2733_p10 = scmp.lt.s32.totalorder %s2731_s26, %s2724_s14 }
  0x70   : > { %p2728_p8 = pneg %p2727_p2  ;;  %p2734_p1 = por %p2733_p10, %p2732_p9 }
  0x72   : > { %p2735_p4 = pnand %p2734_p1, %p2728_p8 }
  0x74   : > { %2738 = shalt.err (!%p2735_p4)
}
  0x75   : > { %s3330_s12 = smov 8   ;;  %s3331_s16 = smov 128  }
  0x76   : > { %2565 = dma.hbm_to_vmem [thread:$0]  (!%p2977_p12), %s3032_s9, 2048, %s3034_s25, %s214_s20, %s3331_s16, %s3331_s16, %s3330_s12  }
  0x77   : > { %s1865_s27 = sshll.u32 %s2839_s21, 7  ;;  %s259_s14 = scalar_lea.vmem [#allocation7], %s1864_s10 }
  0x78   : > { %s264_s13 = scalar_lea.hbm %s3293_s2, %s1865_s27  ;;  %s266_s26 = sshll.u32 %s259_s14, 4  ;;  %s267_s26 = int_to_ptr.vmem [resolvable:$true] %s266_s26 }
  0x79   : > { %s2739_s0 = scalar_lea.hbm %s264_s13, 128  ;;  %s2744_s4 = scalar_lea.hbm %s3293_s2, 384 }
  0x7a   : > { %p2740_p0 = scmp.ne.s32.totalorder %s264_s13, %s2739_s0  ;;  %p2745_p6 = scmp.lt.s32.totalorder %s264_s13, %s3293_s2 }
  0x7b   : > { %p2746_p11 = scmp.lt.s32.totalorder %s2744_s4, %s2739_s0 }
  0x7c   : > { %p2742_p3 = pnand %p2740_p0, %p2996_p5 }
  0x7d   : > { %p2747_p13 = por %p2746_p11, %p2745_p6 }
  0x7e   : > { %p2743_p7 = pneg %p2742_p3 }
  0x80   : > { %p2748_p2 = pnand %p2747_p13, %p2743_p7 }
  0x82   : > { %2751 = shalt.err (!%p2748_p2)
}
  0x83   : > { %s2752_s11 = scalar_lea.vmem %s267_s26, 128  ;;  %s2849_s25 = smov [#allocation7]  }
  0x84   : > { %p2753_p8 = scmp.ne.s32.totalorder %s267_s26, %s2752_s11  ;;  %s2757_s10 = sshll.u32 %s2849_s25, 4  ;;  %s2758_s10 = int_to_ptr.vmem [resolvable:$false] %s2757_s10 }
  0x85   : > { %s2759_s20 = scalar_lea.vmem %s2758_s10, 256  ;;  %p2760_p1 = scmp.lt.s32.totalorder %s267_s26, %s2758_s10 }
  0x86   : > { %p2755_p9 = pnand %p2753_p8, %p2996_p5  ;;  %p2761_p4 = scmp.lt.s32.totalorder %s2759_s20, %s2752_s11 }
  0x88   : > { %p2756_p10 = pneg %p2755_p9  ;;  %p2762_p0 = por %p2761_p4, %p2760_p1 }
  0x8a   : > { %p2763_p3 = pnand %p2762_p0, %p2756_p10 }
  0x8c   : > { %2766 = shalt.err (!%p2763_p3)
}
  0x8d   : > { %2571 = dma.hbm_to_vmem [thread:$0]  (!%p2977_p12), %s264_s13, 128, %s267_s26, %s2990_s28  }
  0x8e   : > { %p3332_p7 = scmp.ne.s32.totalorder %s3320_s7, 0 }
  0x8f   : > { %s3083_s0 = sand.u32 (!%p3332_p7), 1, %s2831_s19   ;;  %p3333_p5 = scmp.ne.s32.totalorder (!%p3332_p7), %s3317_s29, 0 }
  0x90   : > { %275 = sbr.rel (%p3332_p7) target bundleno = 2418 (0x972), region = 40  ;;  %s1867_s1 = sshll.u32 (!%p3332_p7), %s3083_s0, 7 }
  0x91   : > { %s278_s3 = scalar_lea.sflag (!%p3332_p7), [#allocation3], %s3083_s0  ;;  %s3087_s4 = scalar_lea.vmem (!%p3332_p7), [#allocation2], %s1867_s1 }
  0x95   : > { %2810 = dma.done.wait (%p3333_p5), %s278_s3, 2048  }
  0x96   : > { %2812 = vsyncadd (%p3333_p5), %s278_s3, 4294965248  ;;  %s286_s24 = sand.u32 1, %s2904_s22   ;;  %s1868_s7 = sshll.u32 %s3083_s0, 6 }
  0x97   : > { %s287_s23 = scalar_lea.sflag [#allocation6], %s286_s24  ;;  %s3095_s28 = scalar_lea.vmem [#allocation5], %s1868_s7 }
  0x98   : > { %2814 = dma.done.wait (%p3333_p5), %s287_s23, 1152  }
  0x99   : > { %2816 = vsyncadd (%p3333_p5), %s287_s23, 4294966144  ;;  %s1869_s17 = sshll.u32 %s3083_s0, 3  ;;  %p3334_p12 = scmp.eq.s32.totalorder %s2904_s22, 0 }
  0x9a   : > { %s3104_s12 = scalar_lea.vmem [#allocation7], %s1869_s17 }
  0x9b   : > { %2818 = dma.done.wait (%p3334_p12), [#allocation9], 12416   ;;  %p3335_p6 = pmov %p3334_p12 }
  0x9c   : > { %v394_v0 = vld [vmem:[#allocation8 + $0x78] sm:$0xff]  ;;  %v393_v1 = vld [vmem:[#allocation8 + $0x70] sm:$0xff]  ;;  %v392_v2 = vld [vmem:[#allocation8 + $0x68] sm:$0xff]  ;;  %v395_v48 = vlaneseq  ;;  %vm2851_vm0 = vmmov 0   ;;  %s1882_s29 = sshll.u32 %s2904_s22, 7  ;;  %s343_s16 = scalar_lea.vmem [#allocation11], %s1869_s17 }
  0x9d   : > { %2820 = vsyncadd (%p3335_p6), [#allocation9], 4294954880  ;;  %2114 = vmatprep.subr.mxu0 %v394_v0  ;;  %v391_v3 = vld [vmem:[#allocation8 + $0x60] sm:$0xff]  ;;  %v345_v4 = vld [vmem:[%s3087_s4] sm:$0xff]  ;;  %s1721_s27 = sshll.u32 %s343_s16, 4  ;;  %s3255_s13 = scalar_lea.hbm %s3296_s5, %s1882_s29  ;;  %s1722_s27 = int_to_ptr.vmem [resolvable:$true] %s1721_s27 }
  0x9e   : > { %2115 = vmatpush3.msra.mxu0 %v394_v0  ;;  %v390_v5 = vld [vmem:[#allocation8 + $0x58] sm:$0xff]  ;;  %2146 = vmatprep.mubr.f32.mxu0 %v345_v4  ;;  %v389_v6 = vld [vmem:[#allocation8 + $0x50] sm:$0xff]  ;;  %v388_v7 = vld [vmem:[#allocation8 + $0x48] sm:$0xff]  ;;  %v3126_v49 = vshrl.u32 %v395_v48, 7  ;;  %s1708_s14 = scalar_lea.sflag [#allocation4], %s3083_s0  ;;  %s2767_s26 = scalar_lea.vmem %s1722_s27, 128 }
  0x9f   : > { %2116 = vmatprep.subr.mxu0 %v393_v1  ;;  %v560_v8 = vld [vmem:[#allocation8 + $0xf8] sm:$0xff]  ;;  %v559_v9 = vld [vmem:[#allocation8 + $0xf0] sm:$0xff]  ;;  %v387_v10 = vld [vmem:[#allocation8 + $0x40] sm:$0xff]  ;;  %p2768_p11 = scmp.ne.s32.totalorder %s1722_s27, %s2767_s26  ;;  %p3336_p13 = scmp.ne.s32.totalorder %s3318_s30, 0 }
  0xa0   : > { %2117 = vmatpush3.msra.mxu0 %v393_v1  ;;  %2170 = vmatprep.subr.mxu1 %v560_v8  ;;  %v558_v11 = vld [vmem:[#allocation8 + $0xe8] sm:$0xff]  ;;  %v386_v12 = vld [vmem:[#allocation8 + $0x38] sm:$0xff]  ;;  %v385_v13 = vld [vmem:[#allocation8 + $0x30] sm:$0xff]  ;;  %v397_v50 = vsub.s32 0, %v3126_v49  ;;  %s2852_s22 = smov [#allocation11]  }
  0xa1   : > { %2118 = vmatprep.subr.mxu0 %v392_v2  ;;  %2171 = vmatpush3.msra.mxu1 %v560_v8  ;;  %v557_v14 = vld [vmem:[#allocation8 + $0xe0] sm:$0xff]  ;;  %v556_v15 = vld [vmem:[#allocation8 + $0xd8] sm:$0xff]  ;;  %v384_v16 = vld [vmem:[#allocation8 + $0x28] sm:$0xff]  ;;  %p2769_p2 = pnand %p2768_p11, %p3336_p13  ;;  %s2771_s9 = sshll.u32 %s2852_s22, 4  ;;  %s2772_s9 = int_to_ptr.vmem [resolvable:$false] %s2771_s9 }
  0xa2   : > { %2119 = vmatpush3.msra.mxu0 %v392_v2  ;;  %2172 = vmatprep.subr.mxu1 %v559_v9  ;;  %v555_v17 = vld [vmem:[#allocation8 + $0xd0] sm:$0xff]  ;;  %v383_v18 = vld [vmem:[#allocation8 + $0x20] sm:$0xff]  ;;  %v554_v19 = vld [vmem:[#allocation8 + $0xc8] sm:$0xff]  ;;  %s2773_s11 = scalar_lea.vmem %s2772_s9, 256  ;;  %p2774_p9 = scmp.lt.s32.totalorder %s1722_s27, %s2772_s9 }
  0xa3   : > { %2120 = vmatprep.subr.mxu0 %v391_v3  ;;  %2173 = vmatpush3.msra.mxu1 %v559_v9  ;;  %v382_v20 = vld [vmem:[#allocation8 + $0x18] sm:$0xff]  ;;  %v553_v21 = vld [vmem:[#allocation8 + $0xc0] sm:$0xff]  ;;  %v381_v22 = vld [vmem:[#allocation8 + $0x10] sm:$0xff]  ;;  %p2770_p8 = pneg %p2769_p2  ;;  %p2775_p10 = scmp.lt.s32.totalorder %s2773_s11, %s2767_s26 }
  0xa4   : > { %2121 = vmatpush3.msra.mxu0 %v391_v3  ;;  %2174 = vmatprep.subr.mxu1 %v558_v11  ;;  %v552_v23 = vld [vmem:[#allocation8 + $0xb8] sm:$0xff]  ;;  %v380_v24 = vld [vmem:[#allocation8 + $0x8] sm:$0xff]  ;;  %v551_v25 = vld [vmem:[#allocation8 + $0xb0] sm:$0xff] }
  0xa5   : > { %2122 = vmatprep.subr.mxu0 %v390_v5  ;;  %2175 = vmatpush3.msra.mxu1 %v558_v11  ;;  %v379_v26 = vld [vmem:[#allocation8] sm:$0xff]  ;;  %v550_v27 = vld [vmem:[#allocation8 + $0xa8] sm:$0xff]  ;;  %v346_v28 = vld [vmem:[%s3087_s4 + $0x8] sm:$0xff]  ;;  %p2776_p1 = por %p2775_p10, %p2774_p9 }
  0xa6   : > { %2123 = vmatpush3.msra.mxu0 %v390_v5  ;;  %2176 = vmatprep.subr.mxu1 %v557_v14  ;;  %v549_v29 = vld [vmem:[#allocation8 + $0xa0] sm:$0xff]  ;;  %v548_v31 = vld [vmem:[#allocation8 + $0x98] sm:$0xff]  ;;  %v348_v32 = vld [vmem:[%s3087_s4 + $0x18] sm:$0xff] }
  0xa7   : > { %2124 = vmatprep.subr.mxu0 %v389_v6  ;;  %2177 = vmatpush3.msra.mxu1 %v557_v14  ;;  %v347_v30 = vld [vmem:[%s3087_s4 + $0x10] sm:$0xff]  ;;  %v349_v33 = vld [vmem:[%s3087_s4 + $0x20] sm:$0xff]  ;;  %v350_v34 = vld [vmem:[%s3087_s4 + $0x28] sm:$0xff]  ;;  %p2777_p4 = pnand %p2776_p1, %p2770_p8 }
  0xa8   : > { %2125 = vmatpush3.msra.mxu0 %v389_v6  ;;  %2178 = vmatprep.subr.mxu1 %v556_v15  ;;  %v351_v35 = vld [vmem:[%s3087_s4 + $0x30] sm:$0xff]  ;;  %v352_v36 = vld [vmem:[%s3087_s4 + $0x38] sm:$0xff]  ;;  %v353_v37 = vld [vmem:[%s3087_s4 + $0x40] sm:$0xff] }
  0xa9   : > { %2126 = vmatprep.subr.mxu0 %v388_v7  ;;  %2179 = vmatpush3.msra.mxu1 %v556_v15  ;;  %v354_v38 = vld [vmem:[%s3087_s4 + $0x48] sm:$0xff]  ;;  %v355_v39 = vld [vmem:[%s3087_s4 + $0x50] sm:$0xff]  ;;  %v356_v40 = vld [vmem:[%s3087_s4 + $0x58] sm:$0xff] }
  0xaa   : > { %2127 = vmatpush3.msra.mxu0 %v388_v7  ;;  %2180 = vmatprep.subr.mxu1 %v555_v17  ;;  %v357_v41 = vld [vmem:[%s3087_s4 + $0x60] sm:$0xff]  ;;  %v358_v42 = vld [vmem:[%s3087_s4 + $0x68] sm:$0xff]  ;;  %v359_v43 = vld [vmem:[%s3087_s4 + $0x70] sm:$0xff] }
  0xab   : > { %2128 = vmatprep.subr.mxu0 %v387_v10  ;;  %2181 = vmatpush3.msra.mxu1 %v555_v17  ;;  %v360_v44 = vld [vmem:[%s3087_s4 + $0x78] sm:$0xff]  ;;  %v547_v45 = vld [vmem:[#allocation8 + $0x90] sm:$0xff]  ;;  %v545_v47 = vld [vmem:[#allocation8 + $0x80] sm:$0xff] }
  0xac   : > { %2129 = vmatpush3.msra.mxu0 %v387_v10  ;;  %2182 = vmatprep.subr.mxu1 %v554_v19  ;;  %v546_v46 = vld [vmem:[#allocation8 + $0x88] sm:$0xff]  ;;  %v3129_v51 = vld [vmem:[#allocation10] sm:$0xff] }
  0xad   : > { %2130 = vmatprep.subr.mxu0 %v386_v12  ;;  %2183 = vmatpush3.msra.mxu1 %v554_v19  ;;  %v398_v52 = vrot.slane %v3129_v51, %v397_v50 }
  0xae   : > { %2131 = vmatpush3.msra.mxu0 %v386_v12  ;;  %2184 = vmatprep.subr.mxu1 %v553_v21 }
  0xaf   : > { %2132 = vmatprep.subr.mxu0 %v385_v13  ;;  %2185 = vmatpush3.msra.mxu1 %v553_v21  ;;  %v3133_v21 = vld [vmem:[%s3095_s28] sm:$0xff]  }
  0xb0   : > { %2133 = vmatpush3.msra.mxu0 %v385_v13  ;;  %2186 = vmatprep.subr.mxu1 %v552_v23 }
  0xb1   : > { %2134 = vmatprep.subr.mxu0 %v384_v16  ;;  %2187 = vmatpush3.msra.mxu1 %v552_v23  ;;  %v894_v23 = vld [vmem:[#allocation8 + $0x170] sm:$0xff] }
  0xb2   : > { %2135 = vmatpush3.msra.mxu0 %v384_v16  ;;  %2188 = vmatprep.subr.mxu1 %v551_v25 }
  0xb3   : > { %2136 = vmatprep.subr.mxu0 %v383_v18  ;;  %2189 = vmatpush3.msra.mxu1 %v551_v25  ;;  %v892_v25 = vld [vmem:[#allocation8 + $0x160] sm:$0xff] }
  0xb4   : > { %2137 = vmatpush3.msra.mxu0 %v383_v18  ;;  %2190 = vmatprep.subr.mxu1 %v550_v27 }
  0xb5   : > { %2138 = vmatprep.subr.mxu0 %v382_v20  ;;  %2191 = vmatpush3.msra.mxu1 %v550_v27  ;;  %v890_v27 = vld [vmem:[#allocation8 + $0x150] sm:$0xff] }
  0xb6   : > { %2139 = vmatpush3.msra.mxu0 %v382_v20  ;;  %2192 = vmatprep.subr.mxu1 %v549_v29 }
  0xb7   : > { %2140 = vmatprep.subr.mxu0 %v381_v22  ;;  %2193 = vmatpush3.msra.mxu1 %v549_v29  ;;  %v888_v29 = vld [vmem:[#allocation8 + $0x140] sm:$0xff] }
  0xb8   : > { %2141 = vmatpush3.msra.mxu0 %v381_v22  ;;  %2194 = vmatprep.subr.mxu1 %v548_v31  ;;  %v895_v22 = vld [vmem:[#allocation8 + $0x178] sm:$0xff] }
  0xb9   : > { %2142 = vmatprep.subr.mxu0 %v380_v24  ;;  %2195 = vmatpush3.msra.mxu1 %v548_v31  ;;  %v886_v31 = vld [vmem:[#allocation8 + $0x130] sm:$0xff] }
  0xba   : > { %2143 = vmatpush3.msra.mxu0 %v380_v24  ;;  %2196 = vmatprep.subr.mxu1 %v547_v45  ;;  %v893_v24 = vld [vmem:[#allocation8 + $0x168] sm:$0xff] }
  0xbb   : > { %2144 = vmatprep.subr.mxu0 %v379_v26  ;;  %2197 = vmatpush3.msra.mxu1 %v547_v45 }
  0xbc   : > { %2145 = vmatpush3.msra.mxu0 %v379_v26  ;;  %2198 = vmatprep.subr.mxu1 %v546_v46  ;;  %v891_v26 = vld [vmem:[#allocation8 + $0x158] sm:$0xff] }
  0xbd   : > { %2147 = vmatmul.mubr.f32.vlgmr.msra.gmra.mxu0 %v346_v28  ;;  %2199 = vmatpush3.msra.mxu1 %v546_v46  ;;  %v889_v28 = vld [vmem:[#allocation8 + $0x148] sm:$0xff] }
  0xbe   : > { %2149 = vmatprep.mubr.f32.mxu0 %v347_v30  ;;  %2200 = vmatprep.subr.mxu1 %v545_v47  ;;  %v887_v30 = vld [vmem:[#allocation8 + $0x138] sm:$0xff] }
  0xbf   : > { %2201 = vmatpush3.msra.mxu1 %v545_v47 }
  0xc0   : > { %2258 = vmatprep.subr.mxu1 %v895_v22 }
  0xc1   : > { %2150 = vmatmul.mubr.f32.gmra.mxu0 %v348_v32  ;;  %v885_v32 = vld [vmem:[#allocation8 + $0x128] sm:$0xff] }
  0xc2   : > { %2152 = vmatprep.mubr.f32.mxu0 %v349_v33 }
  0xc5   : > { %2153 = vmatmul.mubr.f32.gmra.mxu0 %v350_v34 }
  0xc6   : > { %2155 = vmatprep.mubr.f32.mxu0 %v351_v35 }
  0xc9   : > { %2156 = vmatmul.mubr.f32.gmra.mxu0 %v352_v36 }
  0xca   : > { %2158 = vmatprep.mubr.f32.mxu0 %v353_v37 }
  0xcd   : > { %2159 = vmatmul.mubr.f32.gmra.mxu0 %v354_v38 }
  0xce   : > { %2161 = vmatprep.mubr.f32.mxu0 %v355_v39 }
  0xd1   : > { %2162 = vmatmul.mubr.f32.gmra.mxu0 %v356_v40 }
  0xd2   : > { %2164 = vmatprep.mubr.f32.mxu0 %v357_v41 }
  0xd5   : > { %2165 = vmatmul.mubr.f32.gmra.mxu0 %v358_v42 }
  0xd6   : > { %2167 = vmatprep.mubr.f32.mxu0 %v359_v43 }
  0xd9   : > { %2168 = vmatmul.mubr.f32.gmra.mxu0 %v360_v44 }
  0xda   : > { %2242 = vmatprep.mubr.bf16.mxu0 %v3133_v21 }
 0x17d   : > { %v2148_v53 = vpop.f32.mrf.mxu0 }
 0x17e   : > { %v471_v56 = vadd.f32 %v2148_v53, %v398_v52 }
 0x17f   : > { %v465_v54 = vpop.f32.mrf.mxu0 }
 0x180   : > { %v466_v55 = vadd.f32 %v465_v54, %v398_v52 }
 0x181   : > { %v2151_v57 = vpop.f32.mrf.mxu0 }
 0x182   : > { %2202 = vmatprep.mubr.f32.mxu1 %v466_v55  ;;  %v481_v60 = vadd.f32 %v2151_v57, %v398_v52 }
 0x183   : > { %v475_v58 = vpop.f32.mrf.mxu0  ;;  %2203 = vmatmul.mubr.f32.vlgmr.msra.gmra.mxu1 %v471_v56 }
 0x184   : > { %v476_v59 = vadd.f32 %v475_v58, %v398_v52  ;;  %2259 = vmatpush3.msra.mxu1 %v895_v22 }
 0x185   : > { %v2154_v61 = vpop.f32.mrf.mxu0  ;;  %2260 = vmatprep.subr.mxu1 %v894_v23 }
 0x186   : > { %2205 = vmatprep.mubr.f32.mxu1 %v476_v59  ;;  %v491_v0 = vadd.f32 %v2154_v61, %v398_v52  ;;  %2261 = vmatpush3.msra.mxu1 %v894_v23  ;;  %v3137_v59 = vld [vmem:[%s3095_s28 + $0x8] sm:$0xff]   ;;  %v3145_v61 = vld [vmem:[%s3095_s28 + $0x18] sm:$0xff]  }
 0x187   : > { %v485_v62 = vpop.f32.mrf.mxu0  ;;  %2206 = vmatmul.mubr.f32.gmra.mxu1 %v481_v60  ;;  %2262 = vmatprep.subr.mxu1 %v893_v24  ;;  %v3140_v60 = vld [vmem:[%s3095_s28 + $0x10] sm:$0xff]  }
 0x188   : > { %v486_v63 = vadd.f32 %v485_v62, %v398_v52  ;;  %2263 = vmatpush3.msra.mxu1 %v893_v24  ;;  %v3148_v62 = vld [vmem:[%s3095_s28 + $0x20] sm:$0xff]  }
 0x189   : > { %v2157_v1 = vpop.f32.mrf.mxu0  ;;  %2264 = vmatprep.subr.mxu1 %v892_v25 }
 0x18a   : > { %2208 = vmatprep.mubr.f32.mxu1 %v486_v63  ;;  %v501_v4 = vadd.f32 %v2157_v1, %v398_v52  ;;  %2265 = vmatpush3.msra.mxu1 %v892_v25  ;;  %v3153_v63 = vld [vmem:[%s3095_s28 + $0x28] sm:$0xff]   ;;  %v3161_v1 = vld [vmem:[%s3095_s28 + $0x38] sm:$0xff]  }
 0x18b   : > { %v495_v2 = vpop.f32.mrf.mxu0  ;;  %2209 = vmatmul.mubr.f32.gmra.mxu1 %v491_v0  ;;  %2266 = vmatprep.subr.mxu1 %v891_v26  ;;  %v3156_v0 = vld [vmem:[%s3095_s28 + $0x30] sm:$0xff]  }
 0x18c   : > { %v496_v3 = vadd.f32 %v495_v2, %v398_v52  ;;  %2267 = vmatpush3.msra.mxu1 %v891_v26  ;;  %v884_v2 = vld [vmem:[#allocation8 + $0x120] sm:$0xff] }
 0x18d   : > { %v2160_v5 = vpop.f32.mrf.mxu0  ;;  %2268 = vmatprep.subr.mxu1 %v890_v27 }
 0x18e   : > { %2211 = vmatprep.mubr.f32.mxu1 %v496_v3  ;;  %v511_v8 = vadd.f32 %v2160_v5, %v398_v52  ;;  %2269 = vmatpush3.msra.mxu1 %v890_v27  ;;  %v883_v3 = vld [vmem:[#allocation8 + $0x118] sm:$0xff]  ;;  %v881_v5 = vld [vmem:[#allocation8 + $0x108] sm:$0xff] }
 0x18f   : > { %v505_v6 = vpop.f32.mrf.mxu0  ;;  %2212 = vmatmul.mubr.f32.gmra.mxu1 %v501_v4  ;;  %2270 = vmatprep.subr.mxu1 %v889_v28  ;;  %v882_v4 = vld [vmem:[#allocation8 + $0x110] sm:$0xff] }
 0x190   : > { %v506_v7 = vadd.f32 %v505_v6, %v398_v52  ;;  %2271 = vmatpush3.msra.mxu1 %v889_v28  ;;  %v880_v6 = vld [vmem:[#allocation8 + $0x100] sm:$0xff] }
 0x191   : > { %v2163_v9 = vpop.f32.mrf.mxu0  ;;  %2272 = vmatprep.subr.mxu1 %v888_v29 }
 0x192   : > { %2214 = vmatprep.mubr.f32.mxu1 %v506_v7  ;;  %v521_v12 = vadd.f32 %v2163_v9, %v398_v52  ;;  %2273 = vmatpush3.msra.mxu1 %v888_v29  ;;  %v716_v7 = vsub.s32 1, %v3126_v49 }
 0x193   : > { %v515_v10 = vpop.f32.mrf.mxu0  ;;  %2215 = vmatmul.mubr.f32.gmra.mxu1 %v511_v8  ;;  %2274 = vmatprep.subr.mxu1 %v887_v30 }
 0x194   : > { %v516_v11 = vadd.f32 %v515_v10, %v398_v52  ;;  %2275 = vmatpush3.msra.mxu1 %v887_v30  ;;  %v717_v9 = vrot.slane %v3129_v51, %v716_v7  ;;  %v1178_v7 = vld [vmem:[#allocation8 + $0x1d8] sm:$0xff] }
 0x195   : > { %v2166_v13 = vpop.f32.mrf.mxu0  ;;  %2276 = vmatprep.subr.mxu1 %v886_v31 }
 0x196   : > { %2217 = vmatprep.mubr.f32.mxu1 %v516_v11  ;;  %v531_v16 = vadd.f32 %v2166_v13, %v398_v52  ;;  %2277 = vmatpush3.msra.mxu1 %v886_v31 }
 0x197   : > { %v525_v14 = vpop.f32.mrf.mxu0  ;;  %2218 = vmatmul.mubr.f32.gmra.mxu1 %v521_v12  ;;  %2278 = vmatprep.subr.mxu1 %v885_v32 }
 0x198   : > { %v526_v15 = vadd.f32 %v525_v14, %v398_v52  ;;  %2279 = vmatpush3.msra.mxu1 %v885_v32 }
 0x199   : > { %v2169_v17 = vpop.f32.mrf.mxu0  ;;  %2280 = vmatprep.subr.mxu1 %v884_v2 }
 0x19a   : > { %2220 = vmatprep.mubr.f32.mxu1 %v526_v15  ;;  %v541_v20 = vadd.f32 %v2169_v17, %v398_v52  ;;  %2281 = vmatpush3.msra.mxu1 %v884_v2 }
 0x19b   : > { %v535_v18 = vpop.f32.mrf.mxu0  ;;  %2221 = vmatmul.mubr.f32.gmra.mxu1 %v531_v16  ;;  %2282 = vmatprep.subr.mxu1 %v883_v3 }
 0x19c   : > { %v536_v19 = vadd.f32 %v535_v18, %v398_v52  ;;  %2283 = vmatpush3.msra.mxu1 %v883_v3  ;;  %v1182_v3 = vld [vmem:[#allocation8 + $0x1f8] sm:$0xff] }
 0x19d   : > { %2284 = vmatprep.subr.mxu1 %v882_v4 }
 0x19e   : > { %2223 = vmatprep.mubr.f32.mxu1 %v536_v19  ;;  %2285 = vmatpush3.msra.mxu1 %v882_v4  ;;  %v1181_v4 = vld [vmem:[#allocation8 + $0x1f0] sm:$0xff] }
 0x19f   : > { %2224 = vmatmul.mubr.f32.gmra.mxu1 %v541_v20  ;;  %2286 = vmatprep.subr.mxu1 %v881_v5 }
 0x1a0   : > { %2287 = vmatpush3.msra.mxu1 %v881_v5  ;;  %v1180_v5 = vld [vmem:[#allocation8 + $0x1e8] sm:$0xff] }
 0x1a1   : > { %2288 = vmatprep.subr.mxu1 %v880_v6 }
 0x1a2   : > { %2289 = vmatpush3.msra.mxu1 %v880_v6  ;;  %v1179_v6 = vld [vmem:[#allocation8 + $0x1e0] sm:$0xff] }
 0x1a3   : > { %2346 = vmatprep.subr.mxu1 %v1182_v3 }
 0x243   : > { %v2204_v33 = vpop.f32.mrf.mxu1 }
 0x245   : > { %v627_v34 = vpop.f32.mrf.mxu1 }
 0x246   : > { %v706_v58 = vpack.c.bf16 %v2204_v33, %v627_v34 }
 0x247   : > { %v2207_v35 = vpop.f32.mrf.mxu1 }
 0x249   : > { %v637_v36 = vpop.f32.mrf.mxu1 }
 0x24a   : > { %v707_v57 = vpack.c.bf16 %v2207_v35, %v637_v36 }
 0x24b   : > { %v2210_v37 = vpop.f32.mrf.mxu1 }
 0x24d   : > { %v647_v38 = vpop.f32.mrf.mxu1 }
 0x24e   : > { %v708_v56 = vpack.c.bf16 %v2210_v37, %v647_v38 }
 0x24f   : > { %v2213_v39 = vpop.f32.mrf.mxu1 }
 0x251   : > { %v657_v40 = vpop.f32.mrf.mxu1 }
 0x252   : > { %v709_v55 = vpack.c.bf16 %v2213_v39, %v657_v40 }
 0x253   : > { %v2216_v41 = vpop.f32.mrf.mxu1 }
 0x255   : > { %v667_v42 = vpop.f32.mrf.mxu1 }
 0x256   : > { %v710_v54 = vpack.c.bf16 %v2216_v41, %v667_v42 }
 0x257   : > { %v2219_v43 = vpop.f32.mrf.mxu1 }
 0x259   : > { %v677_v44 = vpop.f32.mrf.mxu1 }
 0x25a   : > { %v711_v53 = vpack.c.bf16 %v2219_v43, %v677_v44 }
 0x25b   : > { %v2222_v45 = vpop.f32.mrf.mxu1 }
 0x25d   : > { %v687_v46 = vpop.f32.mrf.mxu1 }
 0x25e   : > { %v712_v52 = vpack.c.bf16 %v2222_v45, %v687_v46 }
 0x25f   : > { %v2225_v47 = vpop.f32.mrf.mxu1 }
 0x261   : > { %v697_v48 = vpop.f32.mrf.mxu1 }
 0x262   : > { %v713_v50 = vpack.c.bf16 %v2225_v47, %v697_v48 }
 0x264   : > { %2226 = vmatprep.subr.bf16.mxu0 %v713_v50 }
 0x265   : > { %2227 = vmatpush3.bf16.msra.mxu0 %v713_v50 }
 0x266   : > { %2228 = vmatprep.subr.bf16.mxu0 %v712_v52 }
 0x269   : > { %2229 = vmatpush3.bf16.msra.mxu0 %v712_v52 }
 0x26a   : > { %2230 = vmatprep.subr.bf16.mxu0 %v711_v53 }
 0x26d   : > { %2231 = vmatpush3.bf16.msra.mxu0 %v711_v53 }
 0x26e   : > { %2232 = vmatprep.subr.bf16.mxu0 %v710_v54 }
 0x271   : > { %2233 = vmatpush3.bf16.msra.mxu0 %v710_v54 }
 0x272   : > { %2234 = vmatprep.subr.bf16.mxu0 %v709_v55 }
 0x275   : > { %2235 = vmatpush3.bf16.msra.mxu0 %v709_v55 }
 0x276   : > { %2236 = vmatprep.subr.bf16.mxu0 %v708_v56 }
 0x279   : > { %2237 = vmatpush3.bf16.msra.mxu0 %v708_v56 }
 0x27a   : > { %2238 = vmatprep.subr.bf16.mxu0 %v707_v57 }
 0x27d   : > { %2239 = vmatpush3.bf16.msra.mxu0 %v707_v57 }
 0x27e   : > { %2240 = vmatprep.subr.bf16.mxu0 %v706_v58 }
 0x281   : > { %2241 = vmatpush3.bf16.msra.mxu0 %v706_v58 }
 0x284   : > { %2243 = vmatmul.mubr.bf16.vlgmr.msra.gmra.mxu0 %v3137_v59 }
 0x285   : > { %2246 = vmatprep.mubr.bf16.mxu0 %v3140_v60 }
 0x28c   : > { %2247 = vmatmul.mubr.bf16.gmra.mxu0 %v3145_v61 }
 0x28d   : > { %2250 = vmatprep.mubr.bf16.mxu0 %v3148_v62 }
 0x294   : > { %2251 = vmatmul.mubr.bf16.gmra.mxu0 %v3153_v63 }
 0x295   : > { %2254 = vmatprep.mubr.bf16.mxu0 %v3156_v0 }
 0x29c   : > { %2255 = vmatmul.mubr.bf16.gmra.mxu0 %v3161_v1 }
 0x29d   : > { %2330 = vmatprep.mubr.bf16.mxu0 %v3133_v21 }
 0x344   : > { %v2244_v8 = vpop.f32.mrf.mxu0 }
 0x345   : > { %v809_v14 = vadd.f32 %v2244_v8, %v717_v9  ;;  %v1177_v8 = vld [vmem:[#allocation8 + $0x1d0] sm:$0xff] }
 0x346   : > { %v800_v10 = vpop.f32.mrf.mxu0 }
 0x347   : > { %v801_v11 = vadd.f32 %v800_v10, %v717_v9  ;;  %v865_v20 = vmax.f32 %v809_v14, 0.0  ;;  %v1175_v10 = vld [vmem:[#allocation8 + $0x1c0] sm:$0xff] }
 0x348   : > { %v2245_v12 = vpop.f32.mrf.mxu0 }
 0x349   : > { %v863_v13 = vmax.f32 %v801_v11, 0.0  ;;  %v812_v18 = vadd.f32 %v2245_v12, %v717_v9  ;;  %v1174_v11 = vld [vmem:[#allocation8 + $0x1b8] sm:$0xff]  ;;  %v1173_v12 = vld [vmem:[#allocation8 + $0x1b0] sm:$0xff] }
 0x34a   : > { %v803_v15 = vpop.f32.mrf.mxu0 }
 0x34b   : > { %v804_v16 = vadd.f32 %v803_v15, %v717_v9  ;;  %2290 = vmatprep.mubr.f32.mxu1 %v863_v13  ;;  %v866_v25 = vmax.f32 %v812_v18, 0.0  ;;  %v1172_v13 = vld [vmem:[#allocation8 + $0x1a8] sm:$0xff] }
 0x34c   : > { %v2248_v17 = vpop.f32.mrf.mxu0 }
 0x34d   : > { %v864_v19 = vmax.f32 %v804_v16, 0.0  ;;  %v825_v27 = vadd.f32 %v2248_v17, %v717_v9 }
 0x34e   : > { %v816_v22 = vpop.f32.mrf.mxu0 }
 0x34f   : > { %v817_v23 = vadd.f32 %v816_v22, %v717_v9  ;;  %2291 = vmatmul.mubr.f32.vlgmr.msra.gmra.mxu1 %v864_v19  ;;  %v869_v33 = vmax.f32 %v825_v27, 0.0 }
 0x350   : > { %v2249_v24 = vpop.f32.mrf.mxu0  ;;  %2293 = vmatprep.mubr.f32.mxu1 %v865_v20  ;;  %2347 = vmatpush3.msra.mxu1 %v1182_v3 }
 0x351   : > { %v867_v26 = vmax.f32 %v817_v23, 0.0  ;;  %v828_v31 = vadd.f32 %v2249_v24, %v717_v9  ;;  %2348 = vmatprep.subr.mxu1 %v1181_v4 }
 0x352   : > { %v819_v28 = vpop.f32.mrf.mxu0  ;;  %2349 = vmatpush3.msra.mxu1 %v1181_v4 }
 0x353   : > { %v820_v29 = vadd.f32 %v819_v28, %v717_v9  ;;  %2294 = vmatmul.mubr.f32.gmra.mxu1 %v866_v25  ;;  %v870_v37 = vmax.f32 %v828_v31, 0.0  ;;  %2350 = vmatprep.subr.mxu1 %v1180_v5 }
 0x354   : > { %v2252_v30 = vpop.f32.mrf.mxu0  ;;  %2296 = vmatprep.mubr.f32.mxu1 %v867_v26  ;;  %2351 = vmatpush3.msra.mxu1 %v1180_v5 }
 0x355   : > { %v868_v32 = vmax.f32 %v820_v29, 0.0  ;;  %v841_v39 = vadd.f32 %v2252_v30, %v717_v9  ;;  %2352 = vmatprep.subr.mxu1 %v1179_v6 }
 0x356   : > { %v832_v34 = vpop.f32.mrf.mxu0  ;;  %2353 = vmatpush3.msra.mxu1 %v1179_v6 }
 0x357   : > { %v833_v35 = vadd.f32 %v832_v34, %v717_v9  ;;  %2297 = vmatmul.mubr.f32.gmra.mxu1 %v868_v32  ;;  %v873_v45 = vmax.f32 %v841_v39, 0.0  ;;  %2354 = vmatprep.subr.mxu1 %v1178_v7  ;;  %v1171_v39 = vld [vmem:[#allocation8 + $0x1a0] sm:$0xff] }
 0x358   : > { %v2253_v36 = vpop.f32.mrf.mxu0  ;;  %2299 = vmatprep.mubr.f32.mxu1 %v869_v33  ;;  %2355 = vmatpush3.msra.mxu1 %v1178_v7 }
 0x359   : > { %v871_v38 = vmax.f32 %v833_v35, 0.0  ;;  %v844_v43 = vadd.f32 %v2253_v36, %v717_v9  ;;  %2356 = vmatprep.subr.mxu1 %v1177_v8 }
 0x35a   : > { %v835_v40 = vpop.f32.mrf.mxu0  ;;  %2357 = vmatpush3.msra.mxu1 %v1177_v8 }
 0x35b   : > { %v836_v41 = vadd.f32 %v835_v40, %v717_v9  ;;  %2300 = vmatmul.mubr.f32.gmra.mxu1 %v870_v37  ;;  %v874_v50 = vmax.f32 %v844_v43, 0.0  ;;  %v1170_v40 = vld [vmem:[#allocation8 + $0x198] sm:$0xff]  ;;  %v1167_v43 = vld [vmem:[#allocation8 + $0x180] sm:$0xff] }
 0x35c   : > { %v2256_v42 = vpop.f32.mrf.mxu0  ;;  %2302 = vmatprep.mubr.f32.mxu1 %v871_v38 }
 0x35d   : > { %v872_v44 = vmax.f32 %v836_v41, 0.0  ;;  %v857_v53 = vadd.f32 %v2256_v42, %v717_v9  ;;  %v1169_v41 = vld [vmem:[#allocation8 + $0x190] sm:$0xff]  ;;  %v1168_v42 = vld [vmem:[#allocation8 + $0x188] sm:$0xff] }
 0x35e   : > { %v848_v46 = vpop.f32.mrf.mxu0 }
 0x35f   : > { %v849_v47 = vadd.f32 %v848_v46, %v717_v9  ;;  %2303 = vmatmul.mubr.f32.gmra.mxu1 %v872_v44  ;;  %v877_v58 = vmax.f32 %v857_v53, 0.0  ;;  %v1051_v44 = vsub.s32 2, %v3126_v49 }
 0x360   : > { %v2257_v48 = vpop.f32.mrf.mxu0  ;;  %2305 = vmatprep.mubr.f32.mxu1 %v873_v45 }
 0x361   : > { %v875_v52 = vmax.f32 %v849_v47, 0.0  ;;  %v860_v56 = vadd.f32 %v2257_v48, %v717_v9 }
 0x362   : > { %v851_v54 = vpop.f32.mrf.mxu0 }
 0x363   : > { %v852_v55 = vadd.f32 %v851_v54, %v717_v9  ;;  %2306 = vmatmul.mubr.f32.gmra.mxu1 %v874_v50  ;;  %v878_v2 = vmax.f32 %v860_v56, 0.0  ;;  %v1176_v9 = vld [vmem:[#allocation8 + $0x1c8] sm:$0xff] }
 0x364   : > { %2308 = vmatprep.mubr.f32.mxu1 %v875_v52  ;;  %2358 = vmatprep.subr.mxu1 %v1176_v9 }
 0x365   : > { %v876_v57 = vmax.f32 %v852_v55, 0.0  ;;  %2359 = vmatpush3.msra.mxu1 %v1176_v9 }
 0x366   : > { %2360 = vmatprep.subr.mxu1 %v1175_v10 }
 0x367   : > { %2309 = vmatmul.mubr.f32.gmra.mxu1 %v876_v57 }
 0x368   : > { %2311 = vmatprep.mubr.f32.mxu1 %v877_v58  ;;  %2361 = vmatpush3.msra.mxu1 %v1175_v10 }
 0x369   : > { %2362 = vmatprep.subr.mxu1 %v1174_v11 }
 0x36a   : > { %2363 = vmatpush3.msra.mxu1 %v1174_v11 }
 0x36b   : > { %2312 = vmatmul.mubr.f32.gmra.mxu1 %v878_v2  ;;  %2364 = vmatprep.subr.mxu1 %v1173_v12 }
 0x36c   : > { %2365 = vmatpush3.msra.mxu1 %v1173_v12 }
 0x36d   : > { %2366 = vmatprep.subr.mxu1 %v1172_v13 }
 0x36e   : > { %2367 = vmatpush3.msra.mxu1 %v1172_v13 }
 0x36f   : > { %2368 = vmatprep.subr.mxu1 %v1171_v39 }
 0x370   : > { %2369 = vmatpush3.msra.mxu1 %v1171_v39 }
 0x371   : > { %2370 = vmatprep.subr.mxu1 %v1170_v40 }
 0x372   : > { %2371 = vmatpush3.msra.mxu1 %v1170_v40 }
 0x373   : > { %2372 = vmatprep.subr.mxu1 %v1169_v41 }
 0x374   : > { %2373 = vmatpush3.msra.mxu1 %v1169_v41 }
 0x375   : > { %2374 = vmatprep.subr.mxu1 %v1168_v42 }
 0x376   : > { %2375 = vmatpush3.msra.mxu1 %v1168_v42 }
 0x377   : > { %2376 = vmatprep.subr.mxu1 %v1167_v43 }
 0x378   : > { %2377 = vmatpush3.msra.mxu1 %v1167_v43 }
 0x40f   : > { %v2292_v14 = vpop.f32.mrf.mxu1 }
 0x411   : > { %v962_v15 = vpop.f32.mrf.mxu1 }
 0x412   : > { %v1041_v38 = vpack.c.bf16 %v2292_v14, %v962_v15 }
 0x413   : > { %v2295_v16 = vpop.f32.mrf.mxu1 }
 0x415   : > { %v972_v17 = vpop.f32.mrf.mxu1 }
 0x416   : > { %v1042_v37 = vpack.c.bf16 %v2295_v16, %v972_v17 }
 0x417   : > { %v2298_v18 = vpop.f32.mrf.mxu1 }
 0x419   : > { %v982_v19 = vpop.f32.mrf.mxu1 }
 0x41a   : > { %v1043_v36 = vpack.c.bf16 %v2298_v18, %v982_v19 }
 0x41b   : > { %v2301_v20 = vpop.f32.mrf.mxu1 }
 0x41d   : > { %v992_v22 = vpop.f32.mrf.mxu1 }
 0x41e   : > { %v1044_v35 = vpack.c.bf16 %v2301_v20, %v992_v22 }
 0x41f   : > { %v2304_v23 = vpop.f32.mrf.mxu1 }
 0x421   : > { %v1002_v24 = vpop.f32.mrf.mxu1 }
 0x422   : > { %v1045_v34 = vpack.c.bf16 %v2304_v23, %v1002_v24 }
 0x423   : > { %v2307_v25 = vpop.f32.mrf.mxu1 }
 0x425   : > { %v1012_v26 = vpop.f32.mrf.mxu1 }
 0x426   : > { %v1046_v33 = vpack.c.bf16 %v2307_v25, %v1012_v26 }
 0x427   : > { %v2310_v27 = vpop.f32.mrf.mxu1 }
 0x429   : > { %v1022_v28 = vpop.f32.mrf.mxu1 }
 0x42a   : > { %v1047_v32 = vpack.c.bf16 %v2310_v27, %v1022_v28 }
 0x42b   : > { %v2313_v29 = vpop.f32.mrf.mxu1 }
 0x42d   : > { %v1032_v30 = vpop.f32.mrf.mxu1 }
 0x42e   : > { %v1048_v31 = vpack.c.bf16 %v2313_v29, %v1032_v30 }
 0x430   : > { %2314 = vmatprep.subr.bf16.mxu0 %v1048_v31 }
 0x431   : > { %2315 = vmatpush3.bf16.msra.mxu0 %v1048_v31 }
 0x432   : > { %2316 = vmatprep.subr.bf16.mxu0 %v1047_v32 }
 0x435   : > { %2317 = vmatpush3.bf16.msra.mxu0 %v1047_v32 }
 0x436   : > { %2318 = vmatprep.subr.bf16.mxu0 %v1046_v33 }
 0x439   : > { %2319 = vmatpush3.bf16.msra.mxu0 %v1046_v33 }
 0x43a   : > { %2320 = vmatprep.subr.bf16.mxu0 %v1045_v34 }
 0x43d   : > { %2321 = vmatpush3.bf16.msra.mxu0 %v1045_v34 }
 0x43e   : > { %2322 = vmatprep.subr.bf16.mxu0 %v1044_v35 }
 0x441   : > { %2323 = vmatpush3.bf16.msra.mxu0 %v1044_v35 }
 0x442   : > { %2324 = vmatprep.subr.bf16.mxu0 %v1043_v36 }
 0x445   : > { %2325 = vmatpush3.bf16.msra.mxu0 %v1043_v36 }
 0x446   : > { %2326 = vmatprep.subr.bf16.mxu0 %v1042_v37 }
 0x449   : > { %2327 = vmatpush3.bf16.msra.mxu0 %v1042_v37 }
 0x44a   : > { %2328 = vmatprep.subr.bf16.mxu0 %v1041_v38 }
 0x44d   : > { %2329 = vmatpush3.bf16.msra.mxu0 %v1041_v38 }
 0x450   : > { %2331 = vmatmul.mubr.bf16.vlgmr.msra.gmra.mxu0 %v3137_v59 }
 0x451   : > { %2334 = vmatprep.mubr.bf16.mxu0 %v3140_v60 }
 0x458   : > { %2335 = vmatmul.mubr.bf16.gmra.mxu0 %v3145_v61 }
 0x459   : > { %2338 = vmatprep.mubr.bf16.mxu0 %v3148_v62 }
 0x460   : > { %2339 = vmatmul.mubr.bf16.gmra.mxu0 %v3153_v63 }
 0x461   : > { %2342 = vmatprep.mubr.bf16.mxu0 %v3156_v0 }
 0x468   : > { %2343 = vmatmul.mubr.bf16.gmra.mxu0 %v3161_v1 }
 0x469   : > { %2418 = vmatprep.mubr.bf16.mxu0 %v3133_v21  ;;  %v1052_v21 = vrot.slane %v3129_v51, %v1051_v44 }
 0x510   : > { %v2332_v45 = vpop.f32.mrf.mxu0 }
 0x511   : > { %v1096_v52 = vadd.f32 %v2332_v45, %v1052_v21 }
 0x512   : > { %v1087_v46 = vpop.f32.mrf.mxu0 }
 0x513   : > { %v1088_v47 = vadd.f32 %v1087_v46, %v1052_v21  ;;  %v1152_v58 = vmax.f32 %v1096_v52, 0.0 }
 0x514   : > { %v2333_v48 = vpop.f32.mrf.mxu0 }
 0x515   : > { %v1150_v50 = vmax.f32 %v1088_v47, 0.0  ;;  %v1099_v56 = vadd.f32 %v2333_v48, %v1052_v21 }
 0x516   : > { %v1090_v53 = vpop.f32.mrf.mxu0 }
 0x517   : > { %v1091_v54 = vadd.f32 %v1090_v53, %v1052_v21  ;;  %2378 = vmatprep.mubr.f32.mxu1 %v1150_v50  ;;  %v1153_v5 = vmax.f32 %v1099_v56, 0.0 }
 0x518   : > { %v2336_v55 = vpop.f32.mrf.mxu0 }
 0x519   : > { %v1151_v57 = vmax.f32 %v1091_v54, 0.0  ;;  %v1112_v7 = vadd.f32 %v2336_v55, %v1052_v21 }
 0x51a   : > { %v1103_v2 = vpop.f32.mrf.mxu0 }
 0x51b   : > { %v1104_v3 = vadd.f32 %v1103_v2, %v1052_v21  ;;  %2379 = vmatmul.mubr.f32.vlgmr.msra.gmra.mxu1 %v1151_v57  ;;  %v1156_v13 = vmax.f32 %v1112_v7, 0.0  ;;  %v2850_v7 = vmov 0.0  }
 0x51c   : > { %v2337_v4 = vpop.f32.mrf.mxu0  ;;  %2381 = vmatprep.mubr.f32.mxu1 %v1152_v58  ;;  %2434 = vmatprep.subr.mxu1 %v2850_v7 }
 0x51d   : > { %v1154_v6 = vmax.f32 %v1104_v3, 0.0  ;;  %v1115_v11 = vadd.f32 %v2337_v4, %v1052_v21 }
 0x51e   : > { %v1106_v8 = vpop.f32.mrf.mxu0 }
 0x51f   : > { %v1107_v9 = vadd.f32 %v1106_v8, %v1052_v21  ;;  %2382 = vmatmul.mubr.f32.gmra.mxu1 %v1153_v5  ;;  %v1157_v17 = vmax.f32 %v1115_v11, 0.0  ;;  %v1532_v8 = vld [vmem:[#allocation8 + $0x240] sm:$0xff]  ;;  %v1529_v11 = vld [vmem:[#allocation8 + $0x228] sm:$0xff] }
 0x520   : > { %v2340_v10 = vpop.f32.mrf.mxu0  ;;  %2384 = vmatprep.mubr.f32.mxu1 %v1154_v6 }
 0x521   : > { %v1155_v12 = vmax.f32 %v1107_v9, 0.0  ;;  %v1128_v19 = vadd.f32 %v2340_v10, %v1052_v21  ;;  %v1531_v9 = vld [vmem:[#allocation8 + $0x238] sm:$0xff]  ;;  %v1530_v10 = vld [vmem:[#allocation8 + $0x230] sm:$0xff] }
 0x522   : > { %v1119_v14 = vpop.f32.mrf.mxu0 }
 0x523   : > { %v1120_v15 = vadd.f32 %v1119_v14, %v1052_v21  ;;  %2385 = vmatmul.mubr.f32.gmra.mxu1 %v1155_v12  ;;  %v1160_v26 = vmax.f32 %v1128_v19, 0.0  ;;  %v1528_v12 = vld [vmem:[#allocation8 + $0x220] sm:$0xff]  ;;  %v1526_v14 = vld [vmem:[#allocation8 + $0x210] sm:$0xff] }
 0x524   : > { %v2341_v16 = vpop.f32.mrf.mxu0  ;;  %2387 = vmatprep.mubr.f32.mxu1 %v1156_v13  ;;  %v1527_v13 = vld [vmem:[#allocation8 + $0x218] sm:$0xff] }
 0x525   : > { %v1158_v18 = vmax.f32 %v1120_v15, 0.0  ;;  %v1131_v24 = vadd.f32 %v2341_v16, %v1052_v21  ;;  %v1525_v15 = vld [vmem:[#allocation8 + $0x208] sm:$0xff] }
 0x526   : > { %v1122_v20 = vpop.f32.mrf.mxu0 }
 0x527   : > { %v1123_v22 = vadd.f32 %v1122_v20, %v1052_v21  ;;  %2388 = vmatmul.mubr.f32.gmra.mxu1 %v1157_v17  ;;  %v1161_v30 = vmax.f32 %v1131_v24, 0.0 }
 0x528   : > { %v2344_v23 = vpop.f32.mrf.mxu0  ;;  %2390 = vmatprep.mubr.f32.mxu1 %v1158_v18 }
 0x529   : > { %v1159_v25 = vmax.f32 %v1123_v22, 0.0  ;;  %v1144_v32 = vadd.f32 %v2344_v23, %v1052_v21 }
 0x52a   : > { %v1135_v27 = vpop.f32.mrf.mxu0 }
 0x52b   : > { %v1136_v28 = vadd.f32 %v1135_v27, %v1052_v21  ;;  %2391 = vmatmul.mubr.f32.gmra.mxu1 %v1159_v25  ;;  %v1164_v37 = vmax.f32 %v1144_v32, 0.0 }
 0x52c   : > { %v2345_v29 = vpop.f32.mrf.mxu0  ;;  %2393 = vmatprep.mubr.f32.mxu1 %v1160_v26 }
 0x52d   : > { %v1162_v31 = vmax.f32 %v1136_v28, 0.0  ;;  %v1147_v35 = vadd.f32 %v2345_v29, %v1052_v21  ;;  %v1338_v29 = vsub.s32 3, %v3126_v49 }
 0x52e   : > { %v1138_v33 = vpop.f32.mrf.mxu0 }
 0x52f   : > { %v1139_v34 = vadd.f32 %v1138_v33, %v1052_v21  ;;  %2394 = vmatmul.mubr.f32.gmra.mxu1 %v1161_v30  ;;  %v1165_v38 = vmax.f32 %v1147_v35, 0.0  ;;  %v1339_v32 = vrot.slane %v3129_v51, %v1338_v29 }
 0x530   : > { %2396 = vmatprep.mubr.f32.mxu1 %v1162_v31 }
 0x531   : > { %v1163_v36 = vmax.f32 %v1139_v34, 0.0 }
 0x533   : > { %2397 = vmatmul.mubr.f32.gmra.mxu1 %v1163_v36 }
 0x534   : > { %2399 = vmatprep.mubr.f32.mxu1 %v1164_v37 }
 0x537   : > { %2400 = vmatmul.mubr.f32.gmra.mxu1 %v1165_v38 }
 0x538   : > { %2466 = vmatprep.mubr.msk.f32.mxu1 %vm2851_vm0, %v2850_v7 }
 0x5db   : > { %v2380_v39 = vpop.f32.mrf.mxu1 }
 0x5dd   : > { %v1249_v40 = vpop.f32.mrf.mxu1 }
 0x5de   : > { %v1328_v6 = vpack.c.bf16 %v2380_v39, %v1249_v40 }
 0x5df   : > { %v2383_v41 = vpop.f32.mrf.mxu1 }
 0x5e1   : > { %v1259_v42 = vpop.f32.mrf.mxu1 }
 0x5e2   : > { %v1329_v5 = vpack.c.bf16 %v2383_v41, %v1259_v42 }
 0x5e3   : > { %v2386_v43 = vpop.f32.mrf.mxu1 }
 0x5e5   : > { %v1269_v44 = vpop.f32.mrf.mxu1 }
 0x5e6   : > { %v1330_v4 = vpack.c.bf16 %v2386_v43, %v1269_v44 }
 0x5e7   : > { %v2389_v45 = vpop.f32.mrf.mxu1 }
 0x5e9   : > { %v1279_v46 = vpop.f32.mrf.mxu1 }
 0x5ea   : > { %v1331_v3 = vpack.c.bf16 %v2389_v45, %v1279_v46 }
 0x5eb   : > { %v2392_v47 = vpop.f32.mrf.mxu1 }
 0x5ed   : > { %v1289_v48 = vpop.f32.mrf.mxu1 }
 0x5ee   : > { %v1332_v2 = vpack.c.bf16 %v2392_v47, %v1289_v48 }
 0x5ef   : > { %v2395_v50 = vpop.f32.mrf.mxu1 }
 0x5f1   : > { %v1299_v52 = vpop.f32.mrf.mxu1 }
 0x5f2   : > { %v1333_v58 = vpack.c.bf16 %v2395_v50, %v1299_v52 }
 0x5f3   : > { %v2398_v53 = vpop.f32.mrf.mxu1 }
 0x5f5   : > { %v1309_v21 = vpop.f32.mrf.mxu1 }
 0x5f6   : > { %v1334_v57 = vpack.c.bf16 %v2398_v53, %v1309_v21 }
 0x5f7   : > { %v2401_v54 = vpop.f32.mrf.mxu1 }
 0x5f9   : > { %v1319_v55 = vpop.f32.mrf.mxu1 }
 0x5fa   : > { %v1335_v56 = vpack.c.bf16 %v2401_v54, %v1319_v55 }
 0x5fc   : > { %2402 = vmatprep.subr.bf16.mxu0 %v1335_v56 }
 0x5fd   : > { %2403 = vmatpush3.bf16.msra.mxu0 %v1335_v56 }
 0x5fe   : > { %2404 = vmatprep.subr.bf16.mxu0 %v1334_v57 }
 0x601   : > { %2405 = vmatpush3.bf16.msra.mxu0 %v1334_v57 }
 0x602   : > { %2406 = vmatprep.subr.bf16.mxu0 %v1333_v58 }
 0x605   : > { %2407 = vmatpush3.bf16.msra.mxu0 %v1333_v58 }
 0x606   : > { %2408 = vmatprep.subr.bf16.mxu0 %v1332_v2 }
 0x609   : > { %2409 = vmatpush3.bf16.msra.mxu0 %v1332_v2 }
 0x60a   : > { %2410 = vmatprep.subr.bf16.mxu0 %v1331_v3 }
 0x60d   : > { %2411 = vmatpush3.bf16.msra.mxu0 %v1331_v3 }
 0x60e   : > { %2412 = vmatprep.subr.bf16.mxu0 %v1330_v4 }
 0x611   : > { %2413 = vmatpush3.bf16.msra.mxu0 %v1330_v4 }
 0x612   : > { %2414 = vmatprep.subr.bf16.mxu0 %v1329_v5 }
 0x615   : > { %2415 = vmatpush3.bf16.msra.mxu0 %v1329_v5 }
 0x616   : > { %2416 = vmatprep.subr.bf16.mxu0 %v1328_v6 }
 0x619   : > { %2417 = vmatpush3.bf16.msra.mxu0 %v1328_v6 }
 0x61a   : > { %2469 = vmatprep.subr.mxu0 %v2850_v7 }
 0x61c   : > { %2419 = vmatmul.mubr.bf16.vlgmr.msra.gmra.mxu0 %v3137_v59  ;;  %v1539_v59 = vld [vmem:[#allocation8 + $0x278] sm:$0xff] }
 0x61d   : > { %2422 = vmatprep.mubr.bf16.mxu0 %v3140_v60  ;;  %v1538_v60 = vld [vmem:[#allocation8 + $0x270] sm:$0xff]  ;;  %2470 = vmatpush3.msra.mxu0 %v1539_v59 }
 0x61e   : > { %2471 = vmatprep.subr.mxu0 %v2850_v7 }
 0x61f   : > { %2472 = vmatpush3.msra.mxu0 %v1538_v60 }
 0x620   : > { %2473 = vmatprep.subr.mxu0 %v2850_v7 }
 0x624   : > { %2423 = vmatmul.mubr.bf16.gmra.mxu0 %v3145_v61  ;;  %v1537_v61 = vld [vmem:[#allocation8 + $0x268] sm:$0xff] }
 0x625   : > { %2426 = vmatprep.mubr.bf16.mxu0 %v3148_v62  ;;  %v1536_v62 = vld [vmem:[#allocation8 + $0x260] sm:$0xff]  ;;  %2474 = vmatpush3.msra.mxu0 %v1537_v61 }
 0x626   : > { %2475 = vmatprep.subr.mxu0 %v2850_v7 }
 0x627   : > { %2476 = vmatpush3.msra.mxu0 %v1536_v62  ;;  %v377_v62 = vld [vmem:[%s3104_s12] sm:$0xff] }
 0x628   : > { %2477 = vmatprep.subr.mxu0 %v2850_v7 }
 0x62c   : > { %2427 = vmatmul.mubr.bf16.gmra.mxu0 %v3153_v63  ;;  %v1535_v63 = vld [vmem:[#allocation8 + $0x258] sm:$0xff] }
 0x62d   : > { %2430 = vmatprep.mubr.bf16.mxu0 %v3156_v0  ;;  %v1534_v0 = vld [vmem:[#allocation8 + $0x250] sm:$0xff]  ;;  %2478 = vmatpush3.msra.mxu0 %v1535_v63  ;;  %v1524_v63 = vld [vmem:[#allocation8 + $0x200] sm:$0xff] }
 0x62e   : > { %2479 = vmatprep.subr.mxu0 %v2850_v7 }
 0x62f   : > { %2480 = vmatpush3.msra.mxu0 %v1534_v0  ;;  %v1631_v0 = vld [vmem:[#allocation8 + $0x2f8] sm:$0xff] }
 0x630   : > { %2481 = vmatprep.subr.mxu0 %v2850_v7 }
 0x634   : > { %2431 = vmatmul.mubr.bf16.gmra.mxu0 %v3161_v1  ;;  %v1533_v1 = vld [vmem:[#allocation8 + $0x248] sm:$0xff] }
 0x635   : > { %2501 = vmatprep.mubr.msk.f32.mxu0 %vm2851_vm0, %v2850_v7  ;;  %2482 = vmatpush3.msra.mxu0 %v1533_v1  ;;  %v1630_v1 = vld [vmem:[#allocation8 + $0x2f0] sm:$0xff] }
 0x636   : > { %2483 = vmatprep.subr.mxu0 %v2850_v7 }
 0x637   : > { %2484 = vmatpush3.msra.mxu0 %v1532_v8  ;;  %v1629_v8 = vld [vmem:[#allocation8 + $0x2e8] sm:$0xff] }
 0x638   : > { %2485 = vmatprep.subr.mxu0 %v2850_v7 }
 0x639   : > { %2486 = vmatpush3.msra.mxu0 %v1531_v9  ;;  %v1628_v9 = vld [vmem:[#allocation8 + $0x2e0] sm:$0xff] }
 0x63a   : > { %2487 = vmatprep.subr.mxu0 %v2850_v7 }
 0x63b   : > { %2488 = vmatpush3.msra.mxu0 %v1530_v10  ;;  %v1627_v10 = vld [vmem:[#allocation8 + $0x2d8] sm:$0xff] }
 0x63c   : > { %2489 = vmatprep.subr.mxu0 %v2850_v7 }
 0x63d   : > { %2490 = vmatpush3.msra.mxu0 %v1529_v11  ;;  %v1626_v11 = vld [vmem:[#allocation8 + $0x2d0] sm:$0xff] }
 0x63e   : > { %2491 = vmatprep.subr.mxu0 %v2850_v7 }
 0x63f   : > { %2492 = vmatpush3.msra.mxu0 %v1528_v12  ;;  %v1625_v12 = vld [vmem:[#allocation8 + $0x2c8] sm:$0xff] }
 0x640   : > { %2493 = vmatprep.subr.mxu0 %v2850_v7 }
 0x641   : > { %2494 = vmatpush3.msra.mxu0 %v1527_v13  ;;  %v1624_v13 = vld [vmem:[#allocation8 + $0x2c0] sm:$0xff] }
 0x642   : > { %2495 = vmatprep.subr.mxu0 %v2850_v7 }
 0x643   : > { %2496 = vmatpush3.msra.mxu0 %v1526_v14  ;;  %v1623_v14 = vld [vmem:[#allocation8 + $0x2b8] sm:$0xff] }
 0x644   : > { %2497 = vmatprep.subr.mxu0 %v2850_v7 }
 0x645   : > { %2498 = vmatpush3.msra.mxu0 %v1525_v15  ;;  %v1622_v15 = vld [vmem:[#allocation8 + $0x2b0] sm:$0xff] }
 0x646   : > { %2499 = vmatprep.subr.mxu0 %v2850_v7 }
 0x647   : > { %2500 = vmatpush3.msra.mxu0 %v1524_v63 }
 0x6dc   : > { %v2420_v16 = vpop.f32.mrf.mxu0 }
 0x6dd   : > { %v1383_v2 = vadd.f32 %v2420_v16, %v1339_v32  ;;  %v1621_v16 = vld [vmem:[#allocation8 + $0x2a8] sm:$0xff] }
 0x6de   : > { %v3205_v17 = vpop.f32.mrf.mxu0 }
 0x6df   : > { %v1439_v6 = vmax.f32 %v1383_v2, 0.0  ;;  %v1375_v59 = vadd.f32 %v3205_v17, %v1339_v32  ;;  %v1620_v17 = vld [vmem:[#allocation8 + $0x2a0] sm:$0xff] }
 0x6e0   : > { %v2421_v18 = vpop.f32.mrf.mxu0 }
 0x6e1   : > { %v1386_v57 = vadd.f32 %v2421_v18, %v1339_v32  ;;  %v1437_v61 = vmax.f32 %v1375_v59, 0.0  ;;  %v1619_v18 = vld [vmem:[#allocation8 + $0x298] sm:$0xff] }
 0x6e2   : > { %v3207_v19 = vpop.f32.mrf.mxu0 }
 0x6e3   : > { %v1440_v4 = vmax.f32 %v1386_v57, 0.0  ;;  %v1378_v5 = vadd.f32 %v3207_v19, %v1339_v32 }
 0x6e4   : > { %v2424_v20 = vpop.f32.mrf.mxu0 }
 0x6e5   : > { %v1399_v52 = vadd.f32 %v2424_v20, %v1339_v32  ;;  %v1438_v60 = vmax.f32 %v1378_v5, 0.0 }
 0x6e6   : > { %v1390_v22 = vpop.f32.mrf.mxu0 }
 0x6e7   : > { %v1443_v55 = vmax.f32 %v1399_v52, 0.0  ;;  %v1391_v56 = vadd.f32 %v1390_v22, %v1339_v32  ;;  %v1618_v22 = vld [vmem:[#allocation8 + $0x290] sm:$0xff] }
 0x6e8   : > { %v2425_v23 = vpop.f32.mrf.mxu0 }
 0x6e9   : > { %v1402_v48 = vadd.f32 %v2425_v23, %v1339_v32  ;;  %v1441_v3 = vmax.f32 %v1391_v56, 0.0  ;;  %v1617_v23 = vld [vmem:[#allocation8 + $0x288] sm:$0xff] }
 0x6ea   : > { %v1393_v24 = vpop.f32.mrf.mxu0 }
 0x6eb   : > { %v1444_v21 = vmax.f32 %v1402_v48, 0.0  ;;  %v1394_v54 = vadd.f32 %v1393_v24, %v1339_v32  ;;  %v1616_v24 = vld [vmem:[#allocation8 + $0x280] sm:$0xff] }
 0x6ec   : > { %v2428_v25 = vpop.f32.mrf.mxu0 }
 0x6ed   : > { %v1415_v43 = vadd.f32 %v2428_v25, %v1339_v32  ;;  %v1442_v58 = vmax.f32 %v1394_v54, 0.0  ;;  %v1542_v25 = vsub.s32 4, %v3126_v49 }
 0x6ee   : > { %v1406_v26 = vpop.f32.mrf.mxu0 }
 0x6ef   : > { %v1447_v46 = vmax.f32 %v1415_v43, 0.0  ;;  %v1407_v47 = vadd.f32 %v1406_v26, %v1339_v32  ;;  %v2630_v26 = vld [vmem:[#allocation10] sm:$0xff] }
 0x6f0   : > { %v2429_v27 = vpop.f32.mrf.mxu0 }
 0x6f1   : > { %v1418_v41 = vadd.f32 %v2429_v27, %v1339_v32  ;;  %v1445_v53 = vmax.f32 %v1407_v47, 0.0  ;;  %v1543_v27 = vrot.slane %v2630_v26, %v1542_v25 }
 0x6f2   : > { %v1409_v28 = vpop.f32.mrf.mxu0 }
 0x6f3   : > { %v1448_v51 = vmax.f32 %v1418_v41, 0.0  ;;  %v1410_v45 = vadd.f32 %v1409_v28, %v1339_v32 }
 0x6f4   : > { %v2432_v30 = vpop.f32.mrf.mxu0 }
 0x6f5   : > { %v1431_v34 = vadd.f32 %v2432_v30, %v1339_v32  ;;  %v1446_v50 = vmax.f32 %v1410_v45, 0.0 }
 0x6f6   : > { %v1422_v31 = vpop.f32.mrf.mxu0 }
 0x6f7   : > { %v1451_v39 = vmax.f32 %v1431_v34, 0.0  ;;  %v1423_v40 = vadd.f32 %v1422_v31, %v1339_v32 }
 0x6f8   : > { %v2433_v33 = vpop.f32.mrf.mxu0 }
 0x6f9   : > { %v1434_v35 = vadd.f32 %v2433_v33, %v1339_v32  ;;  %v1449_v44 = vmax.f32 %v1423_v40, 0.0 }
 0x6fa   : > { %v1425_v36 = vpop.f32.mrf.mxu0 }
 0x6fb   : > { %v1452_v37 = vmax.f32 %v1434_v35, 0.0  ;;  %v1426_v38 = vadd.f32 %v1425_v36, %v1339_v32  ;;  %v1634_v32 = vsub.s32 5, %v3126_v49 }
 0x6fd   : > { %2435 = vmatpush3.msra.mxu1 %v1452_v37  ;;  %v1450_v42 = vmax.f32 %v1426_v38, 0.0  ;;  %v1635_v33 = vrot.slane %v2630_v26, %v1634_v32 }
 0x6fe   : > { %2436 = vmatprep.subr.mxu1 %v2850_v7 }
 0x6ff   : > { %2437 = vmatpush3.msra.mxu1 %v1451_v39 }
 0x700   : > { %2438 = vmatprep.subr.mxu1 %v2850_v7 }
 0x701   : > { %2439 = vmatpush3.msra.mxu1 %v1450_v42 }
 0x702   : > { %2440 = vmatprep.subr.mxu1 %v2850_v7 }
 0x703   : > { %2441 = vmatpush3.msra.mxu1 %v1449_v44 }
 0x704   : > { %2442 = vmatprep.subr.mxu1 %v2850_v7 }
 0x705   : > { %2443 = vmatpush3.msra.mxu1 %v1448_v51 }
 0x706   : > { %2444 = vmatprep.subr.mxu1 %v2850_v7 }
 0x707   : > { %2445 = vmatpush3.msra.mxu1 %v1447_v46 }
 0x708   : > { %2446 = vmatprep.subr.mxu1 %v2850_v7 }
 0x709   : > { %2447 = vmatpush3.msra.mxu1 %v1446_v50 }
 0x70a   : > { %2448 = vmatprep.subr.mxu1 %v2850_v7 }
 0x70b   : > { %2449 = vmatpush3.msra.mxu1 %v1445_v53 }
 0x70c   : > { %2450 = vmatprep.subr.mxu1 %v2850_v7 }
 0x70d   : > { %2451 = vmatpush3.msra.mxu1 %v1444_v21 }
 0x70e   : > { %2452 = vmatprep.subr.mxu1 %v2850_v7 }
 0x70f   : > { %2453 = vmatpush3.msra.mxu1 %v1443_v55 }
 0x710   : > { %2454 = vmatprep.subr.mxu1 %v2850_v7 }
 0x711   : > { %2455 = vmatpush3.msra.mxu1 %v1442_v58 }
 0x712   : > { %2456 = vmatprep.subr.mxu1 %v2850_v7 }
 0x713   : > { %2457 = vmatpush3.msra.mxu1 %v1441_v3 }
 0x714   : > { %2458 = vmatprep.subr.mxu1 %v2850_v7 }
 0x715   : > { %2459 = vmatpush3.msra.mxu1 %v1440_v4 }
 0x716   : > { %2460 = vmatprep.subr.mxu1 %v2850_v7 }
 0x717   : > { %2461 = vmatpush3.msra.mxu1 %v1439_v6 }
 0x718   : > { %2462 = vmatprep.subr.mxu1 %v2850_v7 }
 0x719   : > { %2463 = vmatpush3.msra.mxu1 %v1438_v60 }
 0x71a   : > { %2464 = vmatprep.subr.mxu1 %v2850_v7 }
 0x71b   : > { %2465 = vmatpush3.msra.mxu1 %v1437_v61 }
 0x71c   : > { %2467 = vmatmul.mubr.f32.vlgmr.msra.gmra.mxu1 %v377_v62  ;;  %2504 = vmatprep.subr.mxu1 %v2850_v7 }
 0x71d   : > { %2536 = vmatprep.mubr.msk.f32.mxu1 %vm2851_vm0, %v2850_v7  ;;  %2505 = vmatpush3.msra.mxu1 %v1631_v0 }
 0x71e   : > { %2506 = vmatprep.subr.mxu1 %v2850_v7 }
 0x71f   : > { %2507 = vmatpush3.msra.mxu1 %v1630_v1 }
 0x720   : > { %2508 = vmatprep.subr.mxu1 %v2850_v7 }
 0x721   : > { %2509 = vmatpush3.msra.mxu1 %v1629_v8 }
 0x722   : > { %2510 = vmatprep.subr.mxu1 %v2850_v7 }
 0x723   : > { %2511 = vmatpush3.msra.mxu1 %v1628_v9 }
 0x724   : > { %2512 = vmatprep.subr.mxu1 %v2850_v7 }
 0x725   : > { %2513 = vmatpush3.msra.mxu1 %v1627_v10 }
 0x726   : > { %2514 = vmatprep.subr.mxu1 %v2850_v7 }
 0x727   : > { %2515 = vmatpush3.msra.mxu1 %v1626_v11 }
 0x728   : > { %2516 = vmatprep.subr.mxu1 %v2850_v7 }
 0x729   : > { %2517 = vmatpush3.msra.mxu1 %v1625_v12 }
 0x72a   : > { %2518 = vmatprep.subr.mxu1 %v2850_v7 }
 0x72b   : > { %2519 = vmatpush3.msra.mxu1 %v1624_v13 }
 0x72c   : > { %2520 = vmatprep.subr.mxu1 %v2850_v7 }
 0x72d   : > { %2521 = vmatpush3.msra.mxu1 %v1623_v14 }
 0x72e   : > { %2522 = vmatprep.subr.mxu1 %v2850_v7 }
 0x72f   : > { %2523 = vmatpush3.msra.mxu1 %v1622_v15 }
 0x730   : > { %2524 = vmatprep.subr.mxu1 %v2850_v7 }
 0x731   : > { %2525 = vmatpush3.msra.mxu1 %v1621_v16 }
 0x732   : > { %2526 = vmatprep.subr.mxu1 %v2850_v7 }
 0x733   : > { %2527 = vmatpush3.msra.mxu1 %v1620_v17 }
 0x734   : > { %2528 = vmatprep.subr.mxu1 %v2850_v7 }
 0x735   : > { %2529 = vmatpush3.msra.mxu1 %v1619_v18 }
 0x736   : > { %2530 = vmatprep.subr.mxu1 %v2850_v7 }
 0x737   : > { %2531 = vmatpush3.msra.mxu1 %v1618_v22 }
 0x738   : > { %2532 = vmatprep.subr.mxu1 %v2850_v7 }
 0x739   : > { %2533 = vmatpush3.msra.mxu1 %v1617_v23 }
 0x73a   : > { %2534 = vmatprep.subr.mxu1 %v2850_v7 }
 0x73b   : > { %2535 = vmatpush3.msra.mxu1 %v1616_v24 }
 0x7dc   : > { %v1519_v19 = vpop.f32.mrf.mxu1 }
 0x7dd   : > { %2502 = vmatmul.mubr.f32.vlgmr.msra.gmra.mxu0 %v1519_v19 }
 0x7de   : > { %v2468_v20 = vpop.f32.mrf.mxu1 }
 0x89d   : > { %v1610_v28 = vpop.f32.mrf.mxu0 }
 0x89e   : > { %v1611_v29 = vadd.f32 %v1610_v28, %v1543_v27 }
 0x89f   : > { %v2503_v30 = vpop.f32.mrf.mxu0 }
 0x8a0   : > { %v1614_v31 = vmax.f32 %v1611_v29, 0.0 }
 0x8a2   : > { %2537 = vmatmul.mubr.f32.vlgmr.msra.gmra.mxu1 %v1614_v31 }
 0x962   : > { %v1702_v7 = vpop.f32.mrf.mxu1 }
 0x963   : > { %v1703_v34 = vadd.f32 %v1702_v7, %v1635_v33 }
 0x964   : > { %v2538_v35 = vpop.f32.mrf.mxu1 }
 0x965   : > { %1706 = vst [vmem:[%s343_s16] sm:$0xff] %v1703_v34 }
 0x966   : > { %2780 = shalt.err (!%p2777_p4)
}
 0x967   : > { %s2781_s25 = scalar_lea.hbm %s3255_s13, 128  ;;  %s2785_s0 = scalar_lea.hbm %s3296_s5, 384 }
 0x968   : > { %p2782_p0 = scmp.ne.s32.totalorder %s3255_s13, %s2781_s25  ;;  %p2786_p5 = scmp.lt.s32.totalorder %s3255_s13, %s3296_s5 }
 0x969   : > { %p2787_p12 = scmp.lt.s32.totalorder %s2785_s0, %s2781_s25 }
 0x96a   : > { %p2783_p3 = pnand %p2782_p0, %p3336_p13 }
 0x96b   : > { %p2788_p6 = por %p2787_p12, %p2786_p5 }
 0x96c   : > { %p2784_p7 = pneg %p2783_p3 }
 0x96e   : > { %p2789_p11 = pnand %p2788_p6, %p2784_p7 }
 0x970   : > { %2792 = shalt.err (!%p2789_p11)
}
 0x971   : > { %2553 = dma.vmem_to_hbm [thread:$0]  (%p3336_p13), %s1722_s27, 128, %s3255_s13, %s1708_s14  }
 0x972 PF: > { %p2581_p2 = scmp.ge.s32.totalorder %s2839_s21, 2  ;;  %s1733_s4 = sand.u32 1, %s2827_s18  }
 0x973   : > { %p3337_p8 = scmp.ne.s32.totalorder %s3319_s6, 0  ;;  %s1734_s24 = scalar_lea.sflag [#allocation4], %s1733_s4 }
 0x975   : > { %p2573_p9 = pnand %p2581_p2, %p3337_p8 }
 0x977   : > { %p2574_p10 = pneg %p2573_p9 }
 0x979   : > { %2822 = dma.done.wait (%p2574_p10), %s1734_s24, 128  }
 0x97a   : > { %2824 = vsyncadd (%p2574_p10), %s1734_s24, 4294967168  ;;  %s3338_s21 = sld [smem:[#allocation17_spill]]  ;;  %s3341_s18 = smov %s2831_s19 }
 0x97b   : > { %s3339_s7 = sld [smem:[#allocation16_spill]] }
 0x97c   : > { %s3340_s20 = sld [smem:[#allocation18_spill]] }
 0x980   : > { %p22_p1 = scmp.ge.s32.totalorder %s3338_s21, 5  }
 0x981   : > { %s3342_s19 = smov %s3339_s7 }
 0x982   :  { %24 = sbr.rel (!%p22_p1) target bundleno = 13 (0xd), region = 122 }
 0x987   :  { %1739 = vsyncpa [#allocation3], 1 }
 0x988   :  { %1741 = vsyncpa [#allocation3 + $0x1], 1 }
 0x989   :  { %1742 = vsyncpa [#allocation6], 1 }
 0x98a   :  { %1744 = vsyncpa [#allocation6 + $0x1], 1 }
 0x98b   :  { %1745 = vsyncpa [#allocation9], 1 }
 0x98c   :  { %1746 = vsyncpa [#allocation4], 1 }
 0x98d   :  { %1748 = vsyncpa [#allocation4 + $0x1], 1 }

</bundles_post_ra>
